<compile_context>
chip_gen: v7x
topology: tpu7x:2x2x1
jax: 0.10.0
libtpu: 0.0.40
codegen_flags: <defaults>
</compile_context>

<pallas_src>
import jax
import jax.numpy as jnp
from jax import lax
from jax.experimental import pallas as pl
from jax.experimental.pallas import tpu as pltpu


_VMEM_LIMIT = 64 * 1024 * 1024


def _round_up(x, m):
    return ((x + m - 1) // m) * m


def _pick_tile(dim, target, align):
    """Largest tile <= target that divides dim and is a multiple of `align`.
    Falls back to the full dim (always a legal block)."""
    if dim <= target:
        return dim
    t = (target // align) * align
    while t >= align:
        if dim % t == 0:
            return t
        t -= align
    return dim


# ----------------------------------------------------------------------------
# Generic tiled matmul + bias kernel:  (M, K) @ (K, N) + (1, N) -> (M, N) f32
# Used for the hoisted input projections and the tied output projection.
# ----------------------------------------------------------------------------
def _matmul_bias_kernel(x_ref, w_ref, b_ref, o_ref):
    o_ref[...] = (
        jnp.dot(x_ref[...], w_ref[...], preferred_element_type=jnp.float32)
        + b_ref[...]
    )


def matmul_bias(x, w, b, *, tile_m=256, tile_n=512):
    M, K = x.shape
    Kw, N = w.shape
    assert K == Kw
    tm = _pick_tile(M, tile_m, 8)
    tn = _pick_tile(N, tile_n, 128)
    cost = pl.CostEstimate(
        flops=2 * M * K * N,
        transcendentals=0,
        bytes_accessed=(x.size * x.dtype.itemsize
                        + w.size * w.dtype.itemsize
                        + b.size * b.dtype.itemsize
                        + M * N * 4),
    )
    return pl.pallas_call(
        _matmul_bias_kernel,
        out_shape=jax.ShapeDtypeStruct((M, N), jnp.float32),
        grid_spec=pltpu.PrefetchScalarGridSpec(
            num_scalar_prefetch=0,
            grid=(M // tm, N // tn),
            in_specs=[
                pl.BlockSpec((tm, K), lambda i, j: (i, 0)),
                pl.BlockSpec((K, tn), lambda i, j: (0, j)),
                pl.BlockSpec((1, tn), lambda i, j: (0, j)),
            ],
            out_specs=pl.BlockSpec((tm, tn), lambda i, j: (i, j)),
        ),
        compiler_params=pltpu.CompilerParams(
            dimension_semantics=("parallel", "parallel"),
            vmem_limit_bytes=_VMEM_LIMIT,
        ),
        cost_estimate=cost,
    )(x, w, b)


# ----------------------------------------------------------------------------
# In-kernel LSTM cell (PyTorch gate order i, f, g, o).  The input projection
# (x @ W_ih + b) is precomputed, so only h @ W_hh is on the serial path.
# Matmul operands bf16, f32 accumulation; elementwise math stays fp32.
# ----------------------------------------------------------------------------
def _lstm_cell(gates_x, h, c, w_hh):
    gates = gates_x + jnp.dot(h.astype(w_hh.dtype), w_hh,
                              preferred_element_type=jnp.float32)
    H = h.shape[-1]
    i = jax.nn.sigmoid(gates[:, 0 * H:1 * H])
    f = jax.nn.sigmoid(gates[:, 1 * H:2 * H])
    g = jnp.tanh(gates[:, 2 * H:3 * H])
    o = jax.nn.sigmoid(gates[:, 3 * H:4 * H])
    c_new = f * c + i * g
    h_new = o * jnp.tanh(c_new)
    return h_new, c_new


# ----------------------------------------------------------------------------
# Encoder recurrence: grid over time chunks; h/c carried in VMEM scratch.
# ----------------------------------------------------------------------------
def _encoder_kernel(gx_ref, whh_ref, h_out_ref, c_out_ref, h_scr, c_scr):
    @pl.when(pl.program_id(0) == 0)
    def _():
        h_scr[...] = jnp.zeros_like(h_scr)
        c_scr[...] = jnp.zeros_like(c_scr)

    w_hh = whh_ref[...]
    tc = gx_ref.shape[0]

    def step(i, carry):
        h, c = carry
        return _lstm_cell(gx_ref[i], h, c, w_hh)

    h, c = lax.fori_loop(0, tc, step, (h_scr[...], c_scr[...]), unroll=True)
    h_scr[...] = h
    c_scr[...] = c
    # write every grid step (cheap, resident output block) for robustness
    h_out_ref[...] = h
    c_out_ref[...] = c


def lstm_encoder(gates_x, w_hh, *, time_chunk=16):
    S, B, G = gates_x.shape
    H = G // 4
    tc = _pick_tile(S, time_chunk, 1)
    cost = pl.CostEstimate(
        flops=2 * S * B * H * G + 12 * S * B * H,
        transcendentals=5 * S * B * H,
        bytes_accessed=(gates_x.size * gates_x.dtype.itemsize
                        + w_hh.size * w_hh.dtype.itemsize + 2 * B * H * 4),
    )
    return pl.pallas_call(
        _encoder_kernel,
        out_shape=(jax.ShapeDtypeStruct((B, H), jnp.float32),
                   jax.ShapeDtypeStruct((B, H), jnp.float32)),
        grid_spec=pltpu.PrefetchScalarGridSpec(
            num_scalar_prefetch=0,
            grid=(S // tc,),
            in_specs=[
                pl.BlockSpec((tc, B, G), lambda t: (t, 0, 0)),
                pl.BlockSpec((H, G), lambda t: (0, 0)),
            ],
            out_specs=(pl.BlockSpec((B, H), lambda t: (0, 0)),
                       pl.BlockSpec((B, H), lambda t: (0, 0))),
            scratch_shapes=[pltpu.VMEM((B, H), jnp.float32),
                            pltpu.VMEM((B, H), jnp.float32)],
        ),
        compiler_params=pltpu.CompilerParams(
            dimension_semantics=("arbitrary",),
            vmem_limit_bytes=_VMEM_LIMIT,
        ),
        cost_estimate=cost,
    )(gates_x, w_hh)


# ----------------------------------------------------------------------------
# Decoder recurrence: like the encoder but initialized from (h0, c0) and
# emitting the full hidden-state sequence (T, B, H).  The tied projection is
# hoisted out and done afterwards as one large matmul.
# ----------------------------------------------------------------------------
def _decoder_kernel(gy_ref, whh_ref, h0_ref, c0_ref, h_seq_ref, h_scr, c_scr):
    @pl.when(pl.program_id(0) == 0)
    def _():
        h_scr[...] = h0_ref[...]
        c_scr[...] = c0_ref[...]

    w_hh = whh_ref[...]
    tc = gy_ref.shape[0]

    def step(i, carry):
        h, c = carry
        h, c = _lstm_cell(gy_ref[i], h, c, w_hh)
        h_seq_ref[i] = h
        return (h, c)

    h, c = lax.fori_loop(0, tc, step, (h_scr[...], c_scr[...]), unroll=True)
    h_scr[...] = h
    c_scr[...] = c


def lstm_decoder(gates_y, w_hh, h0, c0, *, time_chunk=16):
    T, B, G = gates_y.shape
    H = G // 4
    tc = _pick_tile(T, time_chunk, 1)
    cost = pl.CostEstimate(
        flops=2 * T * B * H * G + 12 * T * B * H,
        transcendentals=5 * T * B * H,
        bytes_accessed=(gates_y.size * gates_y.dtype.itemsize
                        + w_hh.size * w_hh.dtype.itemsize
                        + T * B * H * 4 + 2 * B * H * 4),
    )
    return pl.pallas_call(
        _decoder_kernel,
        out_shape=jax.ShapeDtypeStruct((T, B, H), jnp.float32),
        grid_spec=pltpu.PrefetchScalarGridSpec(
            num_scalar_prefetch=0,
            grid=(T // tc,),
            in_specs=[
                pl.BlockSpec((tc, B, G), lambda t: (t, 0, 0)),
                pl.BlockSpec((H, G), lambda t: (0, 0)),
                pl.BlockSpec((B, H), lambda t: (0, 0)),
                pl.BlockSpec((B, H), lambda t: (0, 0)),
            ],
            out_specs=pl.BlockSpec((tc, B, H), lambda t: (t, 0, 0)),
            scratch_shapes=[pltpu.VMEM((B, H), jnp.float32),
                            pltpu.VMEM((B, H), jnp.float32)],
        ),
        compiler_params=pltpu.CompilerParams(
            dimension_semantics=("arbitrary",),
            vmem_limit_bytes=_VMEM_LIMIT,
        ),
        cost_estimate=cost,
    )(gates_y, w_hh, h0, c0)


# ----------------------------------------------------------------------------
# Parameters & forward (single layer, unidirectional, weight tying, dropout=0)
# ----------------------------------------------------------------------------
def init_nmt_params(key, src_vocab, trg_vocab, embed_size, hidden_size):
    assert embed_size == hidden_size, "weight tying requires embed == hidden"
    ks = jax.random.split(key, 8)
    s = 0.1
    return {
        "emb_src": s * jax.random.normal(ks[0], (src_vocab, embed_size), jnp.float32),
        "emb_trg": s * jax.random.normal(ks[1], (trg_vocab, embed_size), jnp.float32),
        "enc_w_ih": s * jax.random.normal(ks[2], (embed_size, 4 * hidden_size), jnp.float32),
        "enc_w_hh": s * jax.random.normal(ks[3], (hidden_size, 4 * hidden_size), jnp.float32),
        "enc_b": s * jax.random.normal(ks[4], (1, 4 * hidden_size), jnp.float32),
        "dec_w_ih": s * jax.random.normal(ks[5], (embed_size, 4 * hidden_size), jnp.float32),
        "dec_w_hh": s * jax.random.normal(ks[6], (hidden_size, 4 * hidden_size), jnp.float32),
        "dec_b": s * jax.random.normal(ks[7], (1, 4 * hidden_size), jnp.float32),
        "b_out": jnp.zeros((1, trg_vocab), jnp.float32),   # tied output weights
    }


def nmt_forward(params, src, trg):
    """src: int32 (B, S), trg: int32 (B, T) -> logits float32 (B, T, V)."""
    B0, S = src.shape
    _, T = trg.shape
    E = params["emb_src"].shape[1]
    H = params["enc_w_hh"].shape[0]
    V = params["emb_trg"].shape[0]

    # --- glue: embedding gather, pad batch to a sublane multiple, bf16 cast ---
    src_emb = jnp.take(params["emb_src"], src, axis=0)          # (B0, S, E)
    trg_emb = jnp.take(params["emb_trg"], trg, axis=0)          # (B0, T, E)
    B = _round_up(B0, 8)
    if B != B0:
        pad = ((0, B - B0), (0, 0), (0, 0))
        src_emb = jnp.pad(src_emb, pad)
        trg_emb = jnp.pad(trg_emb, pad)
    src_emb = jnp.transpose(src_emb, (1, 0, 2)).astype(jnp.bfloat16)   # (S, B, E)
    trg_emb = jnp.transpose(trg_emb, (1, 0, 2)).astype(jnp.bfloat16)   # (T, B, E)

    enc_w_ih = params["enc_w_ih"].astype(jnp.bfloat16)
    dec_w_ih = params["dec_w_ih"].astype(jnp.bfloat16)
    enc_w_hh = params["enc_w_hh"].astype(jnp.bfloat16)
    dec_w_hh = params["dec_w_hh"].astype(jnp.bfloat16)
    w_out_T = params["emb_trg"].T.astype(jnp.bfloat16)                 # (H, V), tied

    # --- hoisted input projections: one large tiled MXU matmul each ---
    gx = matmul_bias(src_emb.reshape(S * B, E), enc_w_ih,
                     params["enc_b"]).reshape(S, B, 4 * H)
    gy = matmul_bias(trg_emb.reshape(T * B, E), dec_w_ih,
                     params["dec_b"]).reshape(T, B, 4 * H)

    # --- sequential recurrences (only h @ W_hh inside the time loop) ---
    h_enc, c_enc = lstm_encoder(gx, enc_w_hh)
    h_seq = lstm_decoder(gy, dec_w_hh, h_enc, c_enc)                   # (T, B, H)

    # --- hoisted tied output projection; transpose the small h tensor so the
    #     logits are produced directly in (B, T, V) layout (V lane-dense). ---
    h_bt = jnp.transpose(h_seq, (1, 0, 2)).astype(jnp.bfloat16)        # (B, T, H)
    logits = matmul_bias(h_bt.reshape(B * T, H), w_out_T,
                         params["b_out"]).reshape(B, T, V)
    return logits[:B0]


# ----------------------------------------------------------------------------
# Pure-JAX fp32 reference (for a sanity check against the bf16 kernels)
# ----------------------------------------------------------------------------
def nmt_reference(params, src, trg):
    src_emb = jnp.take(params["emb_src"], src, axis=0)   # (B, S, E)
    trg_emb = jnp.take(params["emb_trg"], trg, axis=0)   # (B, T, E)
    H = params["enc_w_hh"].shape[0]
    B = src.shape[0]

    def cell(h, c, x, w_ih, w_hh, b):
        gates = x @ w_ih + h @ w_hh + b
        i = jax.nn.sigmoid(gates[:, 0 * H:1 * H])
        f = jax.nn.sigmoid(gates[:, 1 * H:2 * H])
        g = jnp.tanh(gates[:, 2 * H:3 * H])
        o = jax.nn.sigmoid(gates[:, 3 * H:4 * H])
        c = f * c + i * g
        h = o * jnp.tanh(c)
        return h, c

    h = jnp.zeros((B, H), jnp.float32)
    c = jnp.zeros((B, H), jnp.float32)
    for t in range(src.shape[1]):
        h, c = cell(h, c, src_emb[:, t], params["enc_w_ih"],
                    params["enc_w_hh"], params["enc_b"])
    outs = []
    for t in range(trg.shape[1]):
        h, c = cell(h, c, trg_emb[:, t], params["dec_w_ih"],
                    params["dec_w_hh"], params["dec_b"])
        outs.append(h @ params["emb_trg"].T + params["b_out"])
    return jnp.stack(outs, axis=1)


# TODO(synk): Encoder/Decoder class bodies are not given in the spec; any
# attention mechanism inside the original Decoder and the translate()/greedy
# decode path are not reproduced here (dropout=0 is a forward no-op).

if __name__ == "__main__":
    SRC_VOCAB = 64
    TRG_VOCAB = 64
    EMBED = 32
    HIDDEN = 32
    B, S, T = 2, 8, 8

    key = jax.random.PRNGKey(0)
    k_par, k_src, k_trg = jax.random.split(key, 3)

    params = init_nmt_params(k_par, SRC_VOCAB, TRG_VOCAB, EMBED, HIDDEN)
    src = jax.random.randint(k_src, (B, S), 0, SRC_VOCAB, dtype=jnp.int32)
    trg = jax.random.randint(k_trg, (B, T), 0, TRG_VOCAB, dtype=jnp.int32)

    logits = jax.jit(nmt_forward)(params, src, trg)
    logits = jax.block_until_ready(logits)

    assert logits.shape == (B, T, TRG_VOCAB), logits.shape
    assert bool(jnp.all(jnp.isfinite(logits)))

    ref = nmt_reference(params, src, trg)
    max_err = float(jnp.max(jnp.abs(logits - ref)))
    assert max_err < 0.1, f"max abs err vs fp32 reference: {max_err}"

    print("KERNEL_OK")
</pallas_src>

<mosaic_0001>
module attributes {stable_mosaic.version = 11 : i64} {
  func.func @_matmul_bias_kernel(%arg0: i32, %arg1: i32, %arg2: memref<64x32xbf16, #tpu.memory_space<vmem>>, %arg3: memref<32x128xbf16, #tpu.memory_space<vmem>>, %arg4: memref<1x128xf32, #tpu.memory_space<vmem>>, %arg5: memref<64x128xf32, #tpu.memory_space<vmem>>) attributes {dimension_semantics = [#tpu.dimension_semantics<parallel>, #tpu.dimension_semantics<parallel>], iteration_bounds = array<i64: 1, 1>, scalar_prefetch = 0 : i64, scratch_operands = 0 : i64, tpu.core_type = #tpu.core_type<tc>, window_params = [{transform_indices = @transform_0, window_bounds = array<i64: 64, 32>}, {transform_indices = @transform_1, window_bounds = array<i64: 32, 128>}, {transform_indices = @transform_2, window_bounds = array<i64: 1, 128>}, {transform_indices = @transform_3, window_bounds = array<i64: 64, 128>}]} {
    %c0 = arith.constant 0 : index
    %c0_0 = arith.constant 0 : index
    %0 = vector.load %arg2[%c0, %c0_0] : memref<64x32xbf16, #tpu.memory_space<vmem>>, vector<64x32xbf16>
    %c0_1 = arith.constant 0 : index
    %c0_2 = arith.constant 0 : index
    %1 = vector.load %arg3[%c0_1, %c0_2] : memref<32x128xbf16, #tpu.memory_space<vmem>>, vector<32x128xbf16>
    %cst = arith.constant dense<0.000000e+00> : vector<64x128xf32>
    %2 = tpu.matmul %0, %1, %cst {dimension_numbers = #tpu.dot_dimension_numbers<[1], [0], [0], [1], [0, 0, 1, 1], [], []>} : vector<64x32xbf16>, vector<32x128xbf16>, vector<64x128xf32> -> vector<64x128xf32>
    %c0_3 = arith.constant 0 : index
    %c0_4 = arith.constant 0 : index
    %3 = vector.load %arg4[%c0_3, %c0_4] : memref<1x128xf32, #tpu.memory_space<vmem>>, vector<1x128xf32>
    %4 = vector.broadcast %3 : vector<1x128xf32> to vector<64x128xf32>
    %5 = arith.addf %2, %4 : vector<64x128xf32>
    %c0_5 = arith.constant 0 : index
    %c0_6 = arith.constant 0 : index
    %6 = vector.load %arg5[%c0_5, %c0_6] : memref<64x128xf32, #tpu.memory_space<vmem>>, vector<64x128xf32>
    tpu.vector_store %arg5[%c0_5, %c0_6], %5 {strides = array<i32>} : memref<64x128xf32, #tpu.memory_space<vmem>>, vector<64x128xf32>,
    return
  }
  func.func @transform_0(%arg0: i32, %arg1: i32) -> (i32, i32) {
    %c0_i32 = arith.constant 0 : i32
    %c0_i32_0 = arith.constant 0 : i32
    return %arg0, %c0_i32 : i32, i32
  }
  func.func @transform_1(%arg0: i32, %arg1: i32) -> (i32, i32) {
    %c0_i32 = arith.constant 0 : i32
    %c0_i32_0 = arith.constant 0 : i32
    return %c0_i32, %arg1 : i32, i32
  }
  func.func @transform_2(%arg0: i32, %arg1: i32) -> (i32, i32) {
    %c0_i32 = arith.constant 0 : i32
    %c0_i32_0 = arith.constant 0 : i32
    return %c0_i32, %arg1 : i32, i32
  }
  func.func @transform_3(%arg0: i32, %arg1: i32) -> (i32, i32) {
    %c0_i32 = arith.constant 0 : i32
    return %arg0, %arg1 : i32, i32
  }
}

module attributes {stable_mosaic.version = 11 : i64} {
  func.func @_encoder_kernel(%arg0: i32, %arg1: memref<8x8x128xf32, #tpu.memory_space<vmem>>, %arg2: memref<32x128xbf16, #tpu.memory_space<vmem>>, %arg3: memref<8x32xf32, #tpu.memory_space<vmem>>, %arg4: memref<8x32xf32, #tpu.memory_space<vmem>>, %arg5: memref<8x32xf32, #tpu.memory_space<vmem>>, %arg6: memref<8x32xf32, #tpu.memory_space<vmem>>) attributes {dimension_semantics = [#tpu.dimension_semantics<arbitrary>], iteration_bounds = array<i64: 1>, scalar_prefetch = 0 : i64, scratch_operands = 2 : i64, tpu.core_type = #tpu.core_type<tc>, window_params = [{transform_indices = @transform_0, window_bounds = array<i64: 8, 8, 128>}, {pipeline_mode = #tpu.pipeline_mode<synchronous>, transform_indices = @transform_1, window_bounds = array<i64: 32, 128>}, {pipeline_mode = #tpu.pipeline_mode<synchronous>, transform_indices = @transform_2, window_bounds = array<i64: 8, 32>}, {pipeline_mode = #tpu.pipeline_mode<synchronous>, transform_indices = @transform_3, window_bounds = array<i64: 8, 32>}]} {
    %c0_i32 = arith.constant 0 : i32
    %0 = arith.cmpi eq, %arg0, %c0_i32 : i32
    %1 = arith.extui %0 : i1 to i32
    %c0_i32_0 = arith.constant 0 : i32
    %2 = arith.cmpi ne, %1, %c0_i32_0 : i32
    scf.if %2 {
      %cst_62 = arith.constant 0.000000e+00 : f32
      %258 = vector.broadcast %cst_62 : f32 to vector<8x32xf32>
      %c0_63 = arith.constant 0 : index
      %c0_64 = arith.constant 0 : index
      %259 = vector.load %arg5[%c0_63, %c0_64] : memref<8x32xf32, #tpu.memory_space<vmem>>, vector<8x32xf32>
      tpu.vector_store %arg5[%c0_63, %c0_64], %258 {strides = array<i32>} : memref<8x32xf32, #tpu.memory_space<vmem>>, vector<8x32xf32>,
      %cst_65 = arith.constant 0.000000e+00 : f32
      %260 = vector.broadcast %cst_65 : f32 to vector<8x32xf32>
      %c0_66 = arith.constant 0 : index
      %c0_67 = arith.constant 0 : index
      %261 = vector.load %arg6[%c0_66, %c0_67] : memref<8x32xf32, #tpu.memory_space<vmem>>, vector<8x32xf32>
      tpu.vector_store %arg6[%c0_66, %c0_67], %260 {strides = array<i32>} : memref<8x32xf32, #tpu.memory_space<vmem>>, vector<8x32xf32>,
    } else {
    }
    %c0 = arith.constant 0 : index
    %c0_1 = arith.constant 0 : index
    %3 = vector.load %arg2[%c0, %c0_1] : memref<32x128xbf16, #tpu.memory_space<vmem>>, vector<32x128xbf16>
    %c0_2 = arith.constant 0 : index
    %c0_3 = arith.constant 0 : index
    %4 = vector.load %arg5[%c0_2, %c0_3] : memref<8x32xf32, #tpu.memory_space<vmem>>, vector<8x32xf32>
    %c0_4 = arith.constant 0 : index
    %c0_5 = arith.constant 0 : index
    %5 = vector.load %arg6[%c0_4, %c0_5] : memref<8x32xf32, #tpu.memory_space<vmem>>, vector<8x32xf32>
    %c0_i32_6 = arith.constant 0 : i32
    %6 = arith.index_cast %c0_i32_6 : i32 to index
    %c0_7 = arith.constant 0 : index
    %c0_8 = arith.constant 0 : index
    %7 = vector.load %arg1[%6, %c0_7, %c0_8] : memref<8x8x128xf32, #tpu.memory_space<vmem>>, vector<1x8x128xf32>
    %8 = vector.shape_cast %7 : vector<1x8x128xf32> to vector<8x128xf32>
    %9 = arith.truncf %4 : vector<8x32xf32> to vector<8x32xbf16>
    %cst = arith.constant dense<0.000000e+00> : vector<8x128xf32>
    %10 = tpu.matmul %9, %3, %cst {dimension_numbers = #tpu.dot_dimension_numbers<[1], [0], [0], [1], [0, 0, 1, 1], [], []>} : vector<8x32xbf16>, vector<32x128xbf16>, vector<8x128xf32> -> vector<8x128xf32>
    %11 = arith.addf %8, %10 : vector<8x128xf32>
    %12 = vector.extract_strided_slice %11 {offsets = [0, 0], sizes = [8, 32], strides = [1, 1]} : vector<8x128xf32> to vector<8x32xf32>
    %13 = arith.negf %12 : vector<8x32xf32>
    %14 = math.exp %13 : vector<8x32xf32>
    %cst_9 = arith.constant 1.000000e+00 : f32
    %15 = vector.broadcast %cst_9 : f32 to vector<8x32xf32>
    %16 = arith.addf %15, %14 : vector<8x32xf32>
    %17 = arith.divf %15, %16 : vector<8x32xf32>
    %18 = vector.extract_strided_slice %11 {offsets = [0, 32], sizes = [8, 32], strides = [1, 1]} : vector<8x128xf32> to vector<8x32xf32>
    %19 = arith.negf %18 : vector<8x32xf32>
    %20 = math.exp %19 : vector<8x32xf32>
    %cst_10 = arith.constant 1.000000e+00 : f32
    %21 = vector.broadcast %cst_10 : f32 to vector<8x32xf32>
    %22 = arith.addf %21, %20 : vector<8x32xf32>
    %23 = arith.divf %21, %22 : vector<8x32xf32>
    %24 = vector.extract_strided_slice %11 {offsets = [0, 64], sizes = [8, 32], strides = [1, 1]} : vector<8x128xf32> to vector<8x32xf32>
    %25 = math.tanh %24 : vector<8x32xf32>
    %26 = vector.extract_strided_slice %11 {offsets = [0, 96], sizes = [8, 32], strides = [1, 1]} : vector<8x128xf32> to vector<8x32xf32>
    %27 = arith.negf %26 : vector<8x32xf32>
    %28 = math.exp %27 : vector<8x32xf32>
    %cst_11 = arith.constant 1.000000e+00 : f32
    %29 = vector.broadcast %cst_11 : f32 to vector<8x32xf32>
    %30 = arith.addf %29, %28 : vector<8x32xf32>
    %31 = arith.divf %29, %30 : vector<8x32xf32>
    %32 = arith.mulf %23, %5 : vector<8x32xf32>
    %33 = arith.mulf %17, %25 : vector<8x32xf32>
    %34 = arith.addf %32, %33 : vector<8x32xf32>
    %35 = math.tanh %34 : vector<8x32xf32>
    %36 = arith.mulf %31, %35 : vector<8x32xf32>
    %c1_i32 = arith.constant 1 : i32
    %37 = arith.index_cast %c1_i32 : i32 to index
    %c0_12 = arith.constant 0 : index
    %c0_13 = arith.constant 0 : index
    %38 = vector.load %arg1[%37, %c0_12, %c0_13] : memref<8x8x128xf32, #tpu.memory_space<vmem>>, vector<1x8x128xf32>
    %39 = vector.shape_cast %38 : vector<1x8x128xf32> to vector<8x128xf32>
    %40 = arith.truncf %36 : vector<8x32xf32> to vector<8x32xbf16>
    %cst_14 = arith.constant dense<0.000000e+00> : vector<8x128xf32>
    %41 = tpu.matmul %40, %3, %cst_14 {dimension_numbers = #tpu.dot_dimension_numbers<[1], [0], [0], [1], [0, 0, 1, 1], [], []>} : vector<8x32xbf16>, vector<32x128xbf16>, vector<8x128xf32> -> vector<8x128xf32>
    %42 = arith.addf %39, %41 : vector<8x128xf32>
    %43 = vector.extract_strided_slice %42 {offsets = [0, 0], sizes = [8, 32], strides = [1, 1]} : vector<8x128xf32> to vector<8x32xf32>
    %44 = arith.negf %43 : vector<8x32xf32>
    %45 = math.exp %44 : vector<8x32xf32>
    %cst_15 = arith.constant 1.000000e+00 : f32
    %46 = vector.broadcast %cst_15 : f32 to vector<8x32xf32>
    %47 = arith.addf %46, %45 : vector<8x32xf32>
    %48 = arith.divf %46, %47 : vector<8x32xf32>
    %49 = vector.extract_strided_slice %42 {offsets = [0, 32], sizes = [8, 32], strides = [1, 1]} : vector<8x128xf32> to vector<8x32xf32>
    %50 = arith.negf %49 : vector<8x32xf32>
    %51 = math.exp %50 : vector<8x32xf32>
    %cst_16 = arith.constant 1.000000e+00 : f32
    %52 = vector.broadcast %cst_16 : f32 to vector<8x32xf32>
    %53 = arith.addf %52, %51 : vector<8x32xf32>
    %54 = arith.divf %52, %53 : vector<8x32xf32>
    %55 = vector.extract_strided_slice %42 {offsets = [0, 64], sizes = [8, 32], strides = [1, 1]} : vector<8x128xf32> to vector<8x32xf32>
    %56 = math.tanh %55 : vector<8x32xf32>
    %57 = vector.extract_strided_slice %42 {offsets = [0, 96], sizes = [8, 32], strides = [1, 1]} : vector<8x128xf32> to vector<8x32xf32>
    %58 = arith.negf %57 : vector<8x32xf32>
    %59 = math.exp %58 : vector<8x32xf32>
    %cst_17 = arith.constant 1.000000e+00 : f32
    %60 = vector.broadcast %cst_17 : f32 to vector<8x32xf32>
    %61 = arith.addf %60, %59 : vector<8x32xf32>
    %62 = arith.divf %60, %61 : vector<8x32xf32>
    %63 = arith.mulf %54, %34 : vector<8x32xf32>
    %64 = arith.mulf %48, %56 : vector<8x32xf32>
    %65 = arith.addf %63, %64 : vector<8x32xf32>
    %66 = math.tanh %65 : vector<8x32xf32>
    %67 = arith.mulf %62, %66 : vector<8x32xf32>
    %c2_i32 = arith.constant 2 : i32
    %68 = arith.index_cast %c2_i32 : i32 to index
    %c0_18 = arith.constant 0 : index
    %c0_19 = arith.constant 0 : index
    %69 = vector.load %arg1[%68, %c0_18, %c0_19] : memref<8x8x128xf32, #tpu.memory_space<vmem>>, vector<1x8x128xf32>
    %70 = vector.shape_cast %69 : vector<1x8x128xf32> to vector<8x128xf32>
    %71 = arith.truncf %67 : vector<8x32xf32> to vector<8x32xbf16>
    %cst_20 = arith.constant dense<0.000000e+00> : vector<8x128xf32>
    %72 = tpu.matmul %71, %3, %cst_20 {dimension_numbers = #tpu.dot_dimension_numbers<[1], [0], [0], [1], [0, 0, 1, 1], [], []>} : vector<8x32xbf16>, vector<32x128xbf16>, vector<8x128xf32> -> vector<8x128xf32>
    %73 = arith.addf %70, %72 : vector<8x128xf32>
    %74 = vector.extract_strided_slice %73 {offsets = [0, 0], sizes = [8, 32], strides = [1, 1]} : vector<8x128xf32> to vector<8x32xf32>
    %75 = arith.negf %74 : vector<8x32xf32>
    %76 = math.exp %75 : vector<8x32xf32>
    %cst_21 = arith.constant 1.000000e+00 : f32
    %77 = vector.broadcast %cst_21 : f32 to vector<8x32xf32>
    %78 = arith.addf %77, %76 : vector<8x32xf32>
    %79 = arith.divf %77, %78 : vector<8x32xf32>
    %80 = vector.extract_strided_slice %73 {offsets = [0, 32], sizes = [8, 32], strides = [1, 1]} : vector<8x128xf32> to vector<8x32xf32>
    %81 = arith.negf %80 : vector<8x32xf32>
    %82 = math.exp %81 : vector<8x32xf32>
    %cst_22 = arith.constant 1.000000e+00 : f32
    %83 = vector.broadcast %cst_22 : f32 to vector<8x32xf32>
    %84 = arith.addf %83, %82 : vector<8x32xf32>
    %85 = arith.divf %83, %84 : vector<8x32xf32>
    %86 = vector.extract_strided_slice %73 {offsets = [0, 64], sizes = [8, 32], strides = [1, 1]} : vector<8x128xf32> to vector<8x32xf32>
    %87 = math.tanh %86 : vector<8x32xf32>
    %88 = vector.extract_strided_slice %73 {offsets = [0, 96], sizes = [8, 32], strides = [1, 1]} : vector<8x128xf32> to vector<8x32xf32>
    %89 = arith.negf %88 : vector<8x32xf32>
    %90 = math.exp %89 : vector<8x32xf32>
    %cst_23 = arith.constant 1.000000e+00 : f32
    %91 = vector.broadcast %cst_23 : f32 to vector<8x32xf32>
    %92 = arith.addf %91, %90 : vector<8x32xf32>
    %93 = arith.divf %91, %92 : vector<8x32xf32>
    %94 = arith.mulf %85, %65 : vector<8x32xf32>
    %95 = arith.mulf %79, %87 : vector<8x32xf32>
    %96 = arith.addf %94, %95 : vector<8x32xf32>
    %97 = math.tanh %96 : vector<8x32xf32>
    %98 = arith.mulf %93, %97 : vector<8x32xf32>
    %c3_i32 = arith.constant 3 : i32
    %99 = arith.index_cast %c3_i32 : i32 to index
    %c0_24 = arith.constant 0 : index
    %c0_25 = arith.constant 0 : index
    %100 = vector.load %arg1[%99, %c0_24, %c0_25] : memref<8x8x128xf32, #tpu.memory_space<vmem>>, vector<1x8x128xf32>
    %101 = vector.shape_cast %100 : vector<1x8x128xf32> to vector<8x128xf32>
    %102 = arith.truncf %98 : vector<8x32xf32> to vector<8x32xbf16>
    %cst_26 = arith.constant dense<0.000000e+00> : vector<8x128xf32>
    %103 = tpu.matmul %102, %3, %cst_26 {dimension_numbers = #tpu.dot_dimension_numbers<[1], [0], [0], [1], [0, 0, 1, 1], [], []>} : vector<8x32xbf16>, vector<32x128xbf16>, vector<8x128xf32> -> vector<8x128xf32>
    %104 = arith.addf %101, %103 : vector<8x128xf32>
    %105 = vector.extract_strided_slice %104 {offsets = [0, 0], sizes = [8, 32], strides = [1, 1]} : vector<8x128xf32> to vector<8x32xf32>
    %106 = arith.negf %105 : vector<8x32xf32>
    %107 = math.exp %106 : vector<8x32xf32>
    %cst_27 = arith.constant 1.000000e+00 : f32
    %108 = vector.broadcast %cst_27 : f32 to vector<8x32xf32>
    %109 = arith.addf %108, %107 : vector<8x32xf32>
    %110 = arith.divf %108, %109 : vector<8x32xf32>
    %111 = vector.extract_strided_slice %104 {offsets = [0, 32], sizes = [8, 32], strides = [1, 1]} : vector<8x128xf32> to vector<8x32xf32>
    %112 = arith.negf %111 : vector<8x32xf32>
    %113 = math.exp %112 : vector<8x32xf32>
    %cst_28 = arith.constant 1.000000e+00 : f32
    %114 = vector.broadcast %cst_28 : f32 to vector<8x32xf32>
    %115 = arith.addf %114, %113 : vector<8x32xf32>
    %116 = arith.divf %114, %115 : vector<8x32xf32>
    %117 = vector.extract_strided_slice %104 {offsets = [0, 64], sizes = [8, 32], strides = [1, 1]} : vector<8x128xf32> to vector<8x32xf32>
    %118 = math.tanh %117 : vector<8x32xf32>
    %119 = vector.extract_strided_slice %104 {offsets = [0, 96], sizes = [8, 32], strides = [1, 1]} : vector<8x128xf32> to vector<8x32xf32>
    %120 = arith.negf %119 : vector<8x32xf32>
    %121 = math.exp %120 : vector<8x32xf32>
    %cst_29 = arith.constant 1.000000e+00 : f32
    %122 = vector.broadcast %cst_29 : f32 to vector<8x32xf32>
    %123 = arith.addf %122, %121 : vector<8x32xf32>
    %124 = arith.divf %122, %123 : vector<8x32xf32>
    %125 = arith.mulf %116, %96 : vector<8x32xf32>
    %126 = arith.mulf %110, %118 : vector<8x32xf32>
    %127 = arith.addf %125, %126 : vector<8x32xf32>
    %128 = math.tanh %127 : vector<8x32xf32>
    %129 = arith.mulf %124, %128 : vector<8x32xf32>
    %c4_i32 = arith.constant 4 : i32
    %130 = arith.index_cast %c4_i32 : i32 to index
    %c0_30 = arith.constant 0 : index
    %c0_31 = arith.constant 0 : index
    %131 = vector.load %arg1[%130, %c0_30, %c0_31] : memref<8x8x128xf32, #tpu.memory_space<vmem>>, vector<1x8x128xf32>
    %132 = vector.shape_cast %131 : vector<1x8x128xf32> to vector<8x128xf32>
    %133 = arith.truncf %129 : vector<8x32xf32> to vector<8x32xbf16>
    %cst_32 = arith.constant dense<0.000000e+00> : vector<8x128xf32>
    %134 = tpu.matmul %133, %3, %cst_32 {dimension_numbers = #tpu.dot_dimension_numbers<[1], [0], [0], [1], [0, 0, 1, 1], [], []>} : vector<8x32xbf16>, vector<32x128xbf16>, vector<8x128xf32> -> vector<8x128xf32>
    %135 = arith.addf %132, %134 : vector<8x128xf32>
    %136 = vector.extract_strided_slice %135 {offsets = [0, 0], sizes = [8, 32], strides = [1, 1]} : vector<8x128xf32> to vector<8x32xf32>
    %137 = arith.negf %136 : vector<8x32xf32>
    %138 = math.exp %137 : vector<8x32xf32>
    %cst_33 = arith.constant 1.000000e+00 : f32
    %139 = vector.broadcast %cst_33 : f32 to vector<8x32xf32>
    %140 = arith.addf %139, %138 : vector<8x32xf32>
    %141 = arith.divf %139, %140 : vector<8x32xf32>
    %142 = vector.extract_strided_slice %135 {offsets = [0, 32], sizes = [8, 32], strides = [1, 1]} : vector<8x128xf32> to vector<8x32xf32>
    %143 = arith.negf %142 : vector<8x32xf32>
    %144 = math.exp %143 : vector<8x32xf32>
    %cst_34 = arith.constant 1.000000e+00 : f32
    %145 = vector.broadcast %cst_34 : f32 to vector<8x32xf32>
    %146 = arith.addf %145, %144 : vector<8x32xf32>
    %147 = arith.divf %145, %146 : vector<8x32xf32>
    %148 = vector.extract_strided_slice %135 {offsets = [0, 64], sizes = [8, 32], strides = [1, 1]} : vector<8x128xf32> to vector<8x32xf32>
    %149 = math.tanh %148 : vector<8x32xf32>
    %150 = vector.extract_strided_slice %135 {offsets = [0, 96], sizes = [8, 32], strides = [1, 1]} : vector<8x128xf32> to vector<8x32xf32>
    %151 = arith.negf %150 : vector<8x32xf32>
    %152 = math.exp %151 : vector<8x32xf32>
    %cst_35 = arith.constant 1.000000e+00 : f32
    %153 = vector.broadcast %cst_35 : f32 to vector<8x32xf32>
    %154 = arith.addf %153, %152 : vector<8x32xf32>
    %155 = arith.divf %153, %154 : vector<8x32xf32>
    %156 = arith.mulf %147, %127 : vector<8x32xf32>
    %157 = arith.mulf %141, %149 : vector<8x32xf32>
    %158 = arith.addf %156, %157 : vector<8x32xf32>
    %159 = math.tanh %158 : vector<8x32xf32>
    %160 = arith.mulf %155, %159 : vector<8x32xf32>
    %c5_i32 = arith.constant 5 : i32
    %161 = arith.index_cast %c5_i32 : i32 to index
    %c0_36 = arith.constant 0 : index
    %c0_37 = arith.constant 0 : index
    %162 = vector.load %arg1[%161, %c0_36, %c0_37] : memref<8x8x128xf32, #tpu.memory_space<vmem>>, vector<1x8x128xf32>
    %163 = vector.shape_cast %162 : vector<1x8x128xf32> to vector<8x128xf32>
    %164 = arith.truncf %160 : vector<8x32xf32> to vector<8x32xbf16>
    %cst_38 = arith.constant dense<0.000000e+00> : vector<8x128xf32>
    %165 = tpu.matmul %164, %3, %cst_38 {dimension_numbers = #tpu.dot_dimension_numbers<[1], [0], [0], [1], [0, 0, 1, 1], [], []>} : vector<8x32xbf16>, vector<32x128xbf16>, vector<8x128xf32> -> vector<8x128xf32>
    %166 = arith.addf %163, %165 : vector<8x128xf32>
    %167 = vector.extract_strided_slice %166 {offsets = [0, 0], sizes = [8, 32], strides = [1, 1]} : vector<8x128xf32> to vector<8x32xf32>
    %168 = arith.negf %167 : vector<8x32xf32>
    %169 = math.exp %168 : vector<8x32xf32>
    %cst_39 = arith.constant 1.000000e+00 : f32
    %170 = vector.broadcast %cst_39 : f32 to vector<8x32xf32>
    %171 = arith.addf %170, %169 : vector<8x32xf32>
    %172 = arith.divf %170, %171 : vector<8x32xf32>
    %173 = vector.extract_strided_slice %166 {offsets = [0, 32], sizes = [8, 32], strides = [1, 1]} : vector<8x128xf32> to vector<8x32xf32>
    %174 = arith.negf %173 : vector<8x32xf32>
    %175 = math.exp %174 : vector<8x32xf32>
    %cst_40 = arith.constant 1.000000e+00 : f32
    %176 = vector.broadcast %cst_40 : f32 to vector<8x32xf32>
    %177 = arith.addf %176, %175 : vector<8x32xf32>
    %178 = arith.divf %176, %177 : vector<8x32xf32>
    %179 = vector.extract_strided_slice %166 {offsets = [0, 64], sizes = [8, 32], strides = [1, 1]} : vector<8x128xf32> to vector<8x32xf32>
    %180 = math.tanh %179 : vector<8x32xf32>
    %181 = vector.extract_strided_slice %166 {offsets = [0, 96], sizes = [8, 32], strides = [1, 1]} : vector<8x128xf32> to vector<8x32xf32>
    %182 = arith.negf %181 : vector<8x32xf32>
    %183 = math.exp %182 : vector<8x32xf32>
    %cst_41 = arith.constant 1.000000e+00 : f32
    %184 = vector.broadcast %cst_41 : f32 to vector<8x32xf32>
    %185 = arith.addf %184, %183 : vector<8x32xf32>
    %186 = arith.divf %184, %185 : vector<8x32xf32>
    %187 = arith.mulf %178, %158 : vector<8x32xf32>
    %188 = arith.mulf %172, %180 : vector<8x32xf32>
    %189 = arith.addf %187, %188 : vector<8x32xf32>
    %190 = math.tanh %189 : vector<8x32xf32>
    %191 = arith.mulf %186, %190 : vector<8x32xf32>
    %c6_i32 = arith.constant 6 : i32
    %192 = arith.index_cast %c6_i32 : i32 to index
    %c0_42 = arith.constant 0 : index
    %c0_43 = arith.constant 0 : index
    %193 = vector.load %arg1[%192, %c0_42, %c0_43] : memref<8x8x128xf32, #tpu.memory_space<vmem>>, vector<1x8x128xf32>
    %194 = vector.shape_cast %193 : vector<1x8x128xf32> to vector<8x128xf32>
    %195 = arith.truncf %191 : vector<8x32xf32> to vector<8x32xbf16>
    %cst_44 = arith.constant dense<0.000000e+00> : vector<8x128xf32>
    %196 = tpu.matmul %195, %3, %cst_44 {dimension_numbers = #tpu.dot_dimension_numbers<[1], [0], [0], [1], [0, 0, 1, 1], [], []>} : vector<8x32xbf16>, vector<32x128xbf16>, vector<8x128xf32> -> vector<8x128xf32>
    %197 = arith.addf %194, %196 : vector<8x128xf32>
    %198 = vector.extract_strided_slice %197 {offsets = [0, 0], sizes = [8, 32], strides = [1, 1]} : vector<8x128xf32> to vector<8x32xf32>
    %199 = arith.negf %198 : vector<8x32xf32>
    %200 = math.exp %199 : vector<8x32xf32>
    %cst_45 = arith.constant 1.000000e+00 : f32
    %201 = vector.broadcast %cst_45 : f32 to vector<8x32xf32>
    %202 = arith.addf %201, %200 : vector<8x32xf32>
    %203 = arith.divf %201, %202 : vector<8x32xf32>
    %204 = vector.extract_strided_slice %197 {offsets = [0, 32], sizes = [8, 32], strides = [1, 1]} : vector<8x128xf32> to vector<8x32xf32>
    %205 = arith.negf %204 : vector<8x32xf32>
    %206 = math.exp %205 : vector<8x32xf32>
    %cst_46 = arith.constant 1.000000e+00 : f32
    %207 = vector.broadcast %cst_46 : f32 to vector<8x32xf32>
    %208 = arith.addf %207, %206 : vector<8x32xf32>
    %209 = arith.divf %207, %208 : vector<8x32xf32>
    %210 = vector.extract_strided_slice %197 {offsets = [0, 64], sizes = [8, 32], strides = [1, 1]} : vector<8x128xf32> to vector<8x32xf32>
    %211 = math.tanh %210 : vector<8x32xf32>
    %212 = vector.extract_strided_slice %197 {offsets = [0, 96], sizes = [8, 32], strides = [1, 1]} : vector<8x128xf32> to vector<8x32xf32>
    %213 = arith.negf %212 : vector<8x32xf32>
    %214 = math.exp %213 : vector<8x32xf32>
    %cst_47 = arith.constant 1.000000e+00 : f32
    %215 = vector.broadcast %cst_47 : f32 to vector<8x32xf32>
    %216 = arith.addf %215, %214 : vector<8x32xf32>
    %217 = arith.divf %215, %216 : vector<8x32xf32>
    %218 = arith.mulf %209, %189 : vector<8x32xf32>
    %219 = arith.mulf %203, %211 : vector<8x32xf32>
    %220 = arith.addf %218, %219 : vector<8x32xf32>
    %221 = math.tanh %220 : vector<8x32xf32>
    %222 = arith.mulf %217, %221 : vector<8x32xf32>
    %c7_i32 = arith.constant 7 : i32
    %223 = arith.index_cast %c7_i32 : i32 to index
    %c0_48 = arith.constant 0 : index
    %c0_49 = arith.constant 0 : index
    %224 = vector.load %arg1[%223, %c0_48, %c0_49] : memref<8x8x128xf32, #tpu.memory_space<vmem>>, vector<1x8x128xf32>
    %225 = vector.shape_cast %224 : vector<1x8x128xf32> to vector<8x128xf32>
    %226 = arith.truncf %222 : vector<8x32xf32> to vector<8x32xbf16>
    %cst_50 = arith.constant dense<0.000000e+00> : vector<8x128xf32>
    %227 = tpu.matmul %226, %3, %cst_50 {dimension_numbers = #tpu.dot_dimension_numbers<[1], [0], [0], [1], [0, 0, 1, 1], [], []>} : vector<8x32xbf16>, vector<32x128xbf16>, vector<8x128xf32> -> vector<8x128xf32>
    %228 = arith.addf %225, %227 : vector<8x128xf32>
    %229 = vector.extract_strided_slice %228 {offsets = [0, 0], sizes = [8, 32], strides = [1, 1]} : vector<8x128xf32> to vector<8x32xf32>
    %230 = arith.negf %229 : vector<8x32xf32>
    %231 = math.exp %230 : vector<8x32xf32>
    %cst_51 = arith.constant 1.000000e+00 : f32
    %232 = vector.broadcast %cst_51 : f32 to vector<8x32xf32>
    %233 = arith.addf %232, %231 : vector<8x32xf32>
    %234 = arith.divf %232, %233 : vector<8x32xf32>
    %235 = vector.extract_strided_slice %228 {offsets = [0, 32], sizes = [8, 32], strides = [1, 1]} : vector<8x128xf32> to vector<8x32xf32>
    %236 = arith.negf %235 : vector<8x32xf32>
    %237 = math.exp %236 : vector<8x32xf32>
    %cst_52 = arith.constant 1.000000e+00 : f32
    %238 = vector.broadcast %cst_52 : f32 to vector<8x32xf32>
    %239 = arith.addf %238, %237 : vector<8x32xf32>
    %240 = arith.divf %238, %239 : vector<8x32xf32>
    %241 = vector.extract_strided_slice %228 {offsets = [0, 64], sizes = [8, 32], strides = [1, 1]} : vector<8x128xf32> to vector<8x32xf32>
    %242 = math.tanh %241 : vector<8x32xf32>
    %243 = vector.extract_strided_slice %228 {offsets = [0, 96], sizes = [8, 32], strides = [1, 1]} : vector<8x128xf32> to vector<8x32xf32>
    %244 = arith.negf %243 : vector<8x32xf32>
    %245 = math.exp %244 : vector<8x32xf32>
    %cst_53 = arith.constant 1.000000e+00 : f32
    %246 = vector.broadcast %cst_53 : f32 to vector<8x32xf32>
    %247 = arith.addf %246, %245 : vector<8x32xf32>
    %248 = arith.divf %246, %247 : vector<8x32xf32>
    %249 = arith.mulf %240, %220 : vector<8x32xf32>
    %250 = arith.mulf %234, %242 : vector<8x32xf32>
    %251 = arith.addf %249, %250 : vector<8x32xf32>
    %252 = math.tanh %251 : vector<8x32xf32>
    %253 = arith.mulf %248, %252 : vector<8x32xf32>
    %c8_i32 = arith.constant 8 : i32
    %c0_54 = arith.constant 0 : index
    %c0_55 = arith.constant 0 : index
    %254 = vector.load %arg5[%c0_54, %c0_55] : memref<8x32xf32, #tpu.memory_space<vmem>>, vector<8x32xf32>
    tpu.vector_store %arg5[%c0_54, %c0_55], %253 {strides = array<i32>} : memref<8x32xf32, #tpu.memory_space<vmem>>, vector<8x32xf32>,
    %c0_56 = arith.constant 0 : index
    %c0_57 = arith.constant 0 : index
    %255 = vector.load %arg6[%c0_56, %c0_57] : memref<8x32xf32, #tpu.memory_space<vmem>>, vector<8x32xf32>
    tpu.vector_store %arg6[%c0_56, %c0_57], %251 {strides = array<i32>} : memref<8x32xf32, #tpu.memory_space<vmem>>, vector<8x32xf32>,
    %c0_58 = arith.constant 0 : index
    %c0_59 = arith.constant 0 : index
    %256 = vector.load %arg3[%c0_58, %c0_59] : memref<8x32xf32, #tpu.memory_space<vmem>>, vector<8x32xf32>
    tpu.vector_store %arg3[%c0_58, %c0_59], %253 {strides = array<i32>} : memref<8x32xf32, #tpu.memory_space<vmem>>, vector<8x32xf32>,
    %c0_60 = arith.constant 0 : index
    %c0_61 = arith.constant 0 : index
    %257 = vector.load %arg4[%c0_60, %c0_61] : memref<8x32xf32, #tpu.memory_space<vmem>>, vector<8x32xf32>
    tpu.vector_store %arg4[%c0_60, %c0_61], %251 {strides = array<i32>} : memref<8x32xf32, #tpu.memory_space<vmem>>, vector<8x32xf32>,
    return
  }
  func.func @transform_0(%arg0: i32) -> (i32, i32, i32) {
    %c0_i32 = arith.constant 0 : i32
    %c0_i32_0 = arith.constant 0 : i32
    %c0_i32_1 = arith.constant 0 : i32
    return %arg0, %c0_i32, %c0_i32_0 : i32, i32, i32
  }
  func.func @transform_1(%arg0: i32) -> (i32, i32) {
    %c0_i32 = arith.constant 0 : i32
    %c0_i32_0 = arith.constant 0 : i32
    %c0_i32_1 = arith.constant 0 : i32
    return %c0_i32, %c0_i32_0 : i32, i32
  }
  func.func @transform_2(%arg0: i32) -> (i32, i32) {
    %c0_i32 = arith.constant 0 : i32
    %c0_i32_0 = arith.constant 0 : i32
    %c0_i32_1 = arith.constant 0 : i32
    return %c0_i32, %c0_i32_0 : i32, i32
  }
  func.func @transform_3(%arg0: i32) -> (i32, i32) {
    %c0_i32 = arith.constant 0 : i32
    %c0_i32_0 = arith.constant 0 : i32
    %c0_i32_1 = arith.constant 0 : i32
    return %c0_i32, %c0_i32_0 : i32, i32
  }
}

module attributes {stable_mosaic.version = 11 : i64} {
  func.func @_decoder_kernel(%arg0: i32, %arg1: memref<8x8x128xf32, #tpu.memory_space<vmem>>, %arg2: memref<32x128xbf16, #tpu.memory_space<vmem>>, %arg3: memref<8x32xf32, #tpu.memory_space<vmem>>, %arg4: memref<8x32xf32, #tpu.memory_space<vmem>>, %arg5: memref<8x8x32xf32, #tpu.memory_space<vmem>>, %arg6: memref<8x32xf32, #tpu.memory_space<vmem>>, %arg7: memref<8x32xf32, #tpu.memory_space<vmem>>) attributes {dimension_semantics = [#tpu.dimension_semantics<arbitrary>], iteration_bounds = array<i64: 1>, scalar_prefetch = 0 : i64, scratch_operands = 2 : i64, tpu.core_type = #tpu.core_type<tc>, window_params = [{transform_indices = @transform_0, window_bounds = array<i64: 8, 8, 128>}, {pipeline_mode = #tpu.pipeline_mode<synchronous>, transform_indices = @transform_1, window_bounds = array<i64: 32, 128>}, {pipeline_mode = #tpu.pipeline_mode<synchronous>, transform_indices = @transform_2, window_bounds = array<i64: 8, 32>}, {pipeline_mode = #tpu.pipeline_mode<synchronous>, transform_indices = @transform_3, window_bounds = array<i64: 8, 32>}, {transform_indices = @transform_4, window_bounds = array<i64: 8, 8, 32>}]} {
    %c0_i32 = arith.constant 0 : i32
    %0 = arith.cmpi eq, %arg0, %c0_i32 : i32
    %1 = arith.extui %0 : i1 to i32
    %c0_i32_0 = arith.constant 0 : i32
    %2 = arith.cmpi ne, %1, %c0_i32_0 : i32
    scf.if %2 {
      %c0_74 = arith.constant 0 : index
      %c0_75 = arith.constant 0 : index
      %288 = vector.load %arg3[%c0_74, %c0_75] : memref<8x32xf32, #tpu.memory_space<vmem>>, vector<8x32xf32>
      %c0_76 = arith.constant 0 : index
      %c0_77 = arith.constant 0 : index
      %289 = vector.load %arg6[%c0_76, %c0_77] : memref<8x32xf32, #tpu.memory_space<vmem>>, vector<8x32xf32>
      tpu.vector_store %arg6[%c0_76, %c0_77], %288 {strides = array<i32>} : memref<8x32xf32, #tpu.memory_space<vmem>>, vector<8x32xf32>,
      %c0_78 = arith.constant 0 : index
      %c0_79 = arith.constant 0 : index
      %290 = vector.load %arg4[%c0_78, %c0_79] : memref<8x32xf32, #tpu.memory_space<vmem>>, vector<8x32xf32>
      %c0_80 = arith.constant 0 : index
      %c0_81 = arith.constant 0 : index
      %291 = vector.load %arg7[%c0_80, %c0_81] : memref<8x32xf32, #tpu.memory_space<vmem>>, vector<8x32xf32>
      tpu.vector_store %arg7[%c0_80, %c0_81], %290 {strides = array<i32>} : memref<8x32xf32, #tpu.memory_space<vmem>>, vector<8x32xf32>,
    } else {
    }
    %c0 = arith.constant 0 : index
    %c0_1 = arith.constant 0 : index
    %3 = vector.load %arg2[%c0, %c0_1] : memref<32x128xbf16, #tpu.memory_space<vmem>>, vector<32x128xbf16>
    %c0_2 = arith.constant 0 : index
    %c0_3 = arith.constant 0 : index
    %4 = vector.load %arg6[%c0_2, %c0_3] : memref<8x32xf32, #tpu.memory_space<vmem>>, vector<8x32xf32>
    %c0_4 = arith.constant 0 : index
    %c0_5 = arith.constant 0 : index
    %5 = vector.load %arg7[%c0_4, %c0_5] : memref<8x32xf32, #tpu.memory_space<vmem>>, vector<8x32xf32>
    %c0_i32_6 = arith.constant 0 : i32
    %6 = arith.index_cast %c0_i32_6 : i32 to index
    %c0_7 = arith.constant 0 : index
    %c0_8 = arith.constant 0 : index
    %7 = vector.load %arg1[%6, %c0_7, %c0_8] : memref<8x8x128xf32, #tpu.memory_space<vmem>>, vector<1x8x128xf32>
    %8 = vector.shape_cast %7 : vector<1x8x128xf32> to vector<8x128xf32>
    %9 = arith.truncf %4 : vector<8x32xf32> to vector<8x32xbf16>
    %cst = arith.constant dense<0.000000e+00> : vector<8x128xf32>
    %10 = tpu.matmul %9, %3, %cst {dimension_numbers = #tpu.dot_dimension_numbers<[1], [0], [0], [1], [0, 0, 1, 1], [], []>} : vector<8x32xbf16>, vector<32x128xbf16>, vector<8x128xf32> -> vector<8x128xf32>
    %11 = arith.addf %8, %10 : vector<8x128xf32>
    %12 = vector.extract_strided_slice %11 {offsets = [0, 0], sizes = [8, 32], strides = [1, 1]} : vector<8x128xf32> to vector<8x32xf32>
    %13 = arith.negf %12 : vector<8x32xf32>
    %14 = math.exp %13 : vector<8x32xf32>
    %cst_9 = arith.constant 1.000000e+00 : f32
    %15 = vector.broadcast %cst_9 : f32 to vector<8x32xf32>
    %16 = arith.addf %15, %14 : vector<8x32xf32>
    %17 = arith.divf %15, %16 : vector<8x32xf32>
    %18 = vector.extract_strided_slice %11 {offsets = [0, 32], sizes = [8, 32], strides = [1, 1]} : vector<8x128xf32> to vector<8x32xf32>
    %19 = arith.negf %18 : vector<8x32xf32>
    %20 = math.exp %19 : vector<8x32xf32>
    %cst_10 = arith.constant 1.000000e+00 : f32
    %21 = vector.broadcast %cst_10 : f32 to vector<8x32xf32>
    %22 = arith.addf %21, %20 : vector<8x32xf32>
    %23 = arith.divf %21, %22 : vector<8x32xf32>
    %24 = vector.extract_strided_slice %11 {offsets = [0, 64], sizes = [8, 32], strides = [1, 1]} : vector<8x128xf32> to vector<8x32xf32>
    %25 = math.tanh %24 : vector<8x32xf32>
    %26 = vector.extract_strided_slice %11 {offsets = [0, 96], sizes = [8, 32], strides = [1, 1]} : vector<8x128xf32> to vector<8x32xf32>
    %27 = arith.negf %26 : vector<8x32xf32>
    %28 = math.exp %27 : vector<8x32xf32>
    %cst_11 = arith.constant 1.000000e+00 : f32
    %29 = vector.broadcast %cst_11 : f32 to vector<8x32xf32>
    %30 = arith.addf %29, %28 : vector<8x32xf32>
    %31 = arith.divf %29, %30 : vector<8x32xf32>
    %32 = arith.mulf %23, %5 : vector<8x32xf32>
    %33 = arith.mulf %17, %25 : vector<8x32xf32>
    %34 = arith.addf %32, %33 : vector<8x32xf32>
    %35 = math.tanh %34 : vector<8x32xf32>
    %36 = arith.mulf %31, %35 : vector<8x32xf32>
    %37 = arith.index_cast %c0_i32_6 : i32 to index
    %c0_12 = arith.constant 0 : index
    %c0_13 = arith.constant 0 : index
    %38 = vector.load %arg5[%37, %c0_12, %c0_13] : memref<8x8x32xf32, #tpu.memory_space<vmem>>, vector<1x8x32xf32>
    %39 = vector.shape_cast %38 : vector<1x8x32xf32> to vector<8x32xf32>
    %40 = vector.shape_cast %36 : vector<8x32xf32> to vector<1x8x32xf32>
    tpu.vector_store %arg5[%37, %c0_12, %c0_13], %40 {strides = array<i32>} : memref<8x8x32xf32, #tpu.memory_space<vmem>>, vector<1x8x32xf32>,
    %c1_i32 = arith.constant 1 : i32
    %41 = arith.index_cast %c1_i32 : i32 to index
    %c0_14 = arith.constant 0 : index
    %c0_15 = arith.constant 0 : index
    %42 = vector.load %arg1[%41, %c0_14, %c0_15] : memref<8x8x128xf32, #tpu.memory_space<vmem>>, vector<1x8x128xf32>
    %43 = vector.shape_cast %42 : vector<1x8x128xf32> to vector<8x128xf32>
    %44 = arith.truncf %36 : vector<8x32xf32> to vector<8x32xbf16>
    %cst_16 = arith.constant dense<0.000000e+00> : vector<8x128xf32>
    %45 = tpu.matmul %44, %3, %cst_16 {dimension_numbers = #tpu.dot_dimension_numbers<[1], [0], [0], [1], [0, 0, 1, 1], [], []>} : vector<8x32xbf16>, vector<32x128xbf16>, vector<8x128xf32> -> vector<8x128xf32>
    %46 = arith.addf %43, %45 : vector<8x128xf32>
    %47 = vector.extract_strided_slice %46 {offsets = [0, 0], sizes = [8, 32], strides = [1, 1]} : vector<8x128xf32> to vector<8x32xf32>
    %48 = arith.negf %47 : vector<8x32xf32>
    %49 = math.exp %48 : vector<8x32xf32>
    %cst_17 = arith.constant 1.000000e+00 : f32
    %50 = vector.broadcast %cst_17 : f32 to vector<8x32xf32>
    %51 = arith.addf %50, %49 : vector<8x32xf32>
    %52 = arith.divf %50, %51 : vector<8x32xf32>
    %53 = vector.extract_strided_slice %46 {offsets = [0, 32], sizes = [8, 32], strides = [1, 1]} : vector<8x128xf32> to vector<8x32xf32>
    %54 = arith.negf %53 : vector<8x32xf32>
    %55 = math.exp %54 : vector<8x32xf32>
    %cst_18 = arith.constant 1.000000e+00 : f32
    %56 = vector.broadcast %cst_18 : f32 to vector<8x32xf32>
    %57 = arith.addf %56, %55 : vector<8x32xf32>
    %58 = arith.divf %56, %57 : vector<8x32xf32>
    %59 = vector.extract_strided_slice %46 {offsets = [0, 64], sizes = [8, 32], strides = [1, 1]} : vector<8x128xf32> to vector<8x32xf32>
    %60 = math.tanh %59 : vector<8x32xf32>
    %61 = vector.extract_strided_slice %46 {offsets = [0, 96], sizes = [8, 32], strides = [1, 1]} : vector<8x128xf32> to vector<8x32xf32>
    %62 = arith.negf %61 : vector<8x32xf32>
    %63 = math.exp %62 : vector<8x32xf32>
    %cst_19 = arith.constant 1.000000e+00 : f32
    %64 = vector.broadcast %cst_19 : f32 to vector<8x32xf32>
    %65 = arith.addf %64, %63 : vector<8x32xf32>
    %66 = arith.divf %64, %65 : vector<8x32xf32>
    %67 = arith.mulf %58, %34 : vector<8x32xf32>
    %68 = arith.mulf %52, %60 : vector<8x32xf32>
    %69 = arith.addf %67, %68 : vector<8x32xf32>
    %70 = math.tanh %69 : vector<8x32xf32>
    %71 = arith.mulf %66, %70 : vector<8x32xf32>
    %72 = arith.index_cast %c1_i32 : i32 to index
    %c0_20 = arith.constant 0 : index
    %c0_21 = arith.constant 0 : index
    %73 = vector.load %arg5[%72, %c0_20, %c0_21] : memref<8x8x32xf32, #tpu.memory_space<vmem>>, vector<1x8x32xf32>
    %74 = vector.shape_cast %73 : vector<1x8x32xf32> to vector<8x32xf32>
    %75 = vector.shape_cast %71 : vector<8x32xf32> to vector<1x8x32xf32>
    tpu.vector_store %arg5[%72, %c0_20, %c0_21], %75 {strides = array<i32>} : memref<8x8x32xf32, #tpu.memory_space<vmem>>, vector<1x8x32xf32>,
    %c2_i32 = arith.constant 2 : i32
    %76 = arith.index_cast %c2_i32 : i32 to index
    %c0_22 = arith.constant 0 : index
    %c0_23 = arith.constant 0 : index
    %77 = vector.load %arg1[%76, %c0_22, %c0_23] : memref<8x8x128xf32, #tpu.memory_space<vmem>>, vector<1x8x128xf32>
    %78 = vector.shape_cast %77 : vector<1x8x128xf32> to vector<8x128xf32>
    %79 = arith.truncf %71 : vector<8x32xf32> to vector<8x32xbf16>
    %cst_24 = arith.constant dense<0.000000e+00> : vector<8x128xf32>
    %80 = tpu.matmul %79, %3, %cst_24 {dimension_numbers = #tpu.dot_dimension_numbers<[1], [0], [0], [1], [0, 0, 1, 1], [], []>} : vector<8x32xbf16>, vector<32x128xbf16>, vector<8x128xf32> -> vector<8x128xf32>
    %81 = arith.addf %78, %80 : vector<8x128xf32>
    %82 = vector.extract_strided_slice %81 {offsets = [0, 0], sizes = [8, 32], strides = [1, 1]} : vector<8x128xf32> to vector<8x32xf32>
    %83 = arith.negf %82 : vector<8x32xf32>
    %84 = math.exp %83 : vector<8x32xf32>
    %cst_25 = arith.constant 1.000000e+00 : f32
    %85 = vector.broadcast %cst_25 : f32 to vector<8x32xf32>
    %86 = arith.addf %85, %84 : vector<8x32xf32>
    %87 = arith.divf %85, %86 : vector<8x32xf32>
    %88 = vector.extract_strided_slice %81 {offsets = [0, 32], sizes = [8, 32], strides = [1, 1]} : vector<8x128xf32> to vector<8x32xf32>
    %89 = arith.negf %88 : vector<8x32xf32>
    %90 = math.exp %89 : vector<8x32xf32>
    %cst_26 = arith.constant 1.000000e+00 : f32
    %91 = vector.broadcast %cst_26 : f32 to vector<8x32xf32>
    %92 = arith.addf %91, %90 : vector<8x32xf32>
    %93 = arith.divf %91, %92 : vector<8x32xf32>
    %94 = vector.extract_strided_slice %81 {offsets = [0, 64], sizes = [8, 32], strides = [1, 1]} : vector<8x128xf32> to vector<8x32xf32>
    %95 = math.tanh %94 : vector<8x32xf32>
    %96 = vector.extract_strided_slice %81 {offsets = [0, 96], sizes = [8, 32], strides = [1, 1]} : vector<8x128xf32> to vector<8x32xf32>
    %97 = arith.negf %96 : vector<8x32xf32>
    %98 = math.exp %97 : vector<8x32xf32>
    %cst_27 = arith.constant 1.000000e+00 : f32
    %99 = vector.broadcast %cst_27 : f32 to vector<8x32xf32>
    %100 = arith.addf %99, %98 : vector<8x32xf32>
    %101 = arith.divf %99, %100 : vector<8x32xf32>
    %102 = arith.mulf %93, %69 : vector<8x32xf32>
    %103 = arith.mulf %87, %95 : vector<8x32xf32>
    %104 = arith.addf %102, %103 : vector<8x32xf32>
    %105 = math.tanh %104 : vector<8x32xf32>
    %106 = arith.mulf %101, %105 : vector<8x32xf32>
    %107 = arith.index_cast %c2_i32 : i32 to index
    %c0_28 = arith.constant 0 : index
    %c0_29 = arith.constant 0 : index
    %108 = vector.load %arg5[%107, %c0_28, %c0_29] : memref<8x8x32xf32, #tpu.memory_space<vmem>>, vector<1x8x32xf32>
    %109 = vector.shape_cast %108 : vector<1x8x32xf32> to vector<8x32xf32>
    %110 = vector.shape_cast %106 : vector<8x32xf32> to vector<1x8x32xf32>
    tpu.vector_store %arg5[%107, %c0_28, %c0_29], %110 {strides = array<i32>} : memref<8x8x32xf32, #tpu.memory_space<vmem>>, vector<1x8x32xf32>,
    %c3_i32 = arith.constant 3 : i32
    %111 = arith.index_cast %c3_i32 : i32 to index
    %c0_30 = arith.constant 0 : index
    %c0_31 = arith.constant 0 : index
    %112 = vector.load %arg1[%111, %c0_30, %c0_31] : memref<8x8x128xf32, #tpu.memory_space<vmem>>, vector<1x8x128xf32>
    %113 = vector.shape_cast %112 : vector<1x8x128xf32> to vector<8x128xf32>
    %114 = arith.truncf %106 : vector<8x32xf32> to vector<8x32xbf16>
    %cst_32 = arith.constant dense<0.000000e+00> : vector<8x128xf32>
    %115 = tpu.matmul %114, %3, %cst_32 {dimension_numbers = #tpu.dot_dimension_numbers<[1], [0], [0], [1], [0, 0, 1, 1], [], []>} : vector<8x32xbf16>, vector<32x128xbf16>, vector<8x128xf32> -> vector<8x128xf32>
    %116 = arith.addf %113, %115 : vector<8x128xf32>
    %117 = vector.extract_strided_slice %116 {offsets = [0, 0], sizes = [8, 32], strides = [1, 1]} : vector<8x128xf32> to vector<8x32xf32>
    %118 = arith.negf %117 : vector<8x32xf32>
    %119 = math.exp %118 : vector<8x32xf32>
    %cst_33 = arith.constant 1.000000e+00 : f32
    %120 = vector.broadcast %cst_33 : f32 to vector<8x32xf32>
    %121 = arith.addf %120, %119 : vector<8x32xf32>
    %122 = arith.divf %120, %121 : vector<8x32xf32>
    %123 = vector.extract_strided_slice %116 {offsets = [0, 32], sizes = [8, 32], strides = [1, 1]} : vector<8x128xf32> to vector<8x32xf32>
    %124 = arith.negf %123 : vector<8x32xf32>
    %125 = math.exp %124 : vector<8x32xf32>
    %cst_34 = arith.constant 1.000000e+00 : f32
    %126 = vector.broadcast %cst_34 : f32 to vector<8x32xf32>
    %127 = arith.addf %126, %125 : vector<8x32xf32>
    %128 = arith.divf %126, %127 : vector<8x32xf32>
    %129 = vector.extract_strided_slice %116 {offsets = [0, 64], sizes = [8, 32], strides = [1, 1]} : vector<8x128xf32> to vector<8x32xf32>
    %130 = math.tanh %129 : vector<8x32xf32>
    %131 = vector.extract_strided_slice %116 {offsets = [0, 96], sizes = [8, 32], strides = [1, 1]} : vector<8x128xf32> to vector<8x32xf32>
    %132 = arith.negf %131 : vector<8x32xf32>
    %133 = math.exp %132 : vector<8x32xf32>
    %cst_35 = arith.constant 1.000000e+00 : f32
    %134 = vector.broadcast %cst_35 : f32 to vector<8x32xf32>
    %135 = arith.addf %134, %133 : vector<8x32xf32>
    %136 = arith.divf %134, %135 : vector<8x32xf32>
    %137 = arith.mulf %128, %104 : vector<8x32xf32>
    %138 = arith.mulf %122, %130 : vector<8x32xf32>
    %139 = arith.addf %137, %138 : vector<8x32xf32>
    %140 = math.tanh %139 : vector<8x32xf32>
    %141 = arith.mulf %136, %140 : vector<8x32xf32>
    %142 = arith.index_cast %c3_i32 : i32 to index
    %c0_36 = arith.constant 0 : index
    %c0_37 = arith.constant 0 : index
    %143 = vector.load %arg5[%142, %c0_36, %c0_37] : memref<8x8x32xf32, #tpu.memory_space<vmem>>, vector<1x8x32xf32>
    %144 = vector.shape_cast %143 : vector<1x8x32xf32> to vector<8x32xf32>
    %145 = vector.shape_cast %141 : vector<8x32xf32> to vector<1x8x32xf32>
    tpu.vector_store %arg5[%142, %c0_36, %c0_37], %145 {strides = array<i32>} : memref<8x8x32xf32, #tpu.memory_space<vmem>>, vector<1x8x32xf32>,
    %c4_i32 = arith.constant 4 : i32
    %146 = arith.index_cast %c4_i32 : i32 to index
    %c0_38 = arith.constant 0 : index
    %c0_39 = arith.constant 0 : index
    %147 = vector.load %arg1[%146, %c0_38, %c0_39] : memref<8x8x128xf32, #tpu.memory_space<vmem>>, vector<1x8x128xf32>
    %148 = vector.shape_cast %147 : vector<1x8x128xf32> to vector<8x128xf32>
    %149 = arith.truncf %141 : vector<8x32xf32> to vector<8x32xbf16>
    %cst_40 = arith.constant dense<0.000000e+00> : vector<8x128xf32>
    %150 = tpu.matmul %149, %3, %cst_40 {dimension_numbers = #tpu.dot_dimension_numbers<[1], [0], [0], [1], [0, 0, 1, 1], [], []>} : vector<8x32xbf16>, vector<32x128xbf16>, vector<8x128xf32> -> vector<8x128xf32>
    %151 = arith.addf %148, %150 : vector<8x128xf32>
    %152 = vector.extract_strided_slice %151 {offsets = [0, 0], sizes = [8, 32], strides = [1, 1]} : vector<8x128xf32> to vector<8x32xf32>
    %153 = arith.negf %152 : vector<8x32xf32>
    %154 = math.exp %153 : vector<8x32xf32>
    %cst_41 = arith.constant 1.000000e+00 : f32
    %155 = vector.broadcast %cst_41 : f32 to vector<8x32xf32>
    %156 = arith.addf %155, %154 : vector<8x32xf32>
    %157 = arith.divf %155, %156 : vector<8x32xf32>
    %158 = vector.extract_strided_slice %151 {offsets = [0, 32], sizes = [8, 32], strides = [1, 1]} : vector<8x128xf32> to vector<8x32xf32>
    %159 = arith.negf %158 : vector<8x32xf32>
    %160 = math.exp %159 : vector<8x32xf32>
    %cst_42 = arith.constant 1.000000e+00 : f32
    %161 = vector.broadcast %cst_42 : f32 to vector<8x32xf32>
    %162 = arith.addf %161, %160 : vector<8x32xf32>
    %163 = arith.divf %161, %162 : vector<8x32xf32>
    %164 = vector.extract_strided_slice %151 {offsets = [0, 64], sizes = [8, 32], strides = [1, 1]} : vector<8x128xf32> to vector<8x32xf32>
    %165 = math.tanh %164 : vector<8x32xf32>
    %166 = vector.extract_strided_slice %151 {offsets = [0, 96], sizes = [8, 32], strides = [1, 1]} : vector<8x128xf32> to vector<8x32xf32>
    %167 = arith.negf %166 : vector<8x32xf32>
    %168 = math.exp %167 : vector<8x32xf32>
    %cst_43 = arith.constant 1.000000e+00 : f32
    %169 = vector.broadcast %cst_43 : f32 to vector<8x32xf32>
    %170 = arith.addf %169, %168 : vector<8x32xf32>
    %171 = arith.divf %169, %170 : vector<8x32xf32>
    %172 = arith.mulf %163, %139 : vector<8x32xf32>
    %173 = arith.mulf %157, %165 : vector<8x32xf32>
    %174 = arith.addf %172, %173 : vector<8x32xf32>
    %175 = math.tanh %174 : vector<8x32xf32>
    %176 = arith.mulf %171, %175 : vector<8x32xf32>
    %177 = arith.index_cast %c4_i32 : i32 to index
    %c0_44 = arith.constant 0 : index
    %c0_45 = arith.constant 0 : index
    %178 = vector.load %arg5[%177, %c0_44, %c0_45] : memref<8x8x32xf32, #tpu.memory_space<vmem>>, vector<1x8x32xf32>
    %179 = vector.shape_cast %178 : vector<1x8x32xf32> to vector<8x32xf32>
    %180 = vector.shape_cast %176 : vector<8x32xf32> to vector<1x8x32xf32>
    tpu.vector_store %arg5[%177, %c0_44, %c0_45], %180 {strides = array<i32>} : memref<8x8x32xf32, #tpu.memory_space<vmem>>, vector<1x8x32xf32>,
    %c5_i32 = arith.constant 5 : i32
    %181 = arith.index_cast %c5_i32 : i32 to index
    %c0_46 = arith.constant 0 : index
    %c0_47 = arith.constant 0 : index
    %182 = vector.load %arg1[%181, %c0_46, %c0_47] : memref<8x8x128xf32, #tpu.memory_space<vmem>>, vector<1x8x128xf32>
    %183 = vector.shape_cast %182 : vector<1x8x128xf32> to vector<8x128xf32>
    %184 = arith.truncf %176 : vector<8x32xf32> to vector<8x32xbf16>
    %cst_48 = arith.constant dense<0.000000e+00> : vector<8x128xf32>
    %185 = tpu.matmul %184, %3, %cst_48 {dimension_numbers = #tpu.dot_dimension_numbers<[1], [0], [0], [1], [0, 0, 1, 1], [], []>} : vector<8x32xbf16>, vector<32x128xbf16>, vector<8x128xf32> -> vector<8x128xf32>
    %186 = arith.addf %183, %185 : vector<8x128xf32>
    %187 = vector.extract_strided_slice %186 {offsets = [0, 0], sizes = [8, 32], strides = [1, 1]} : vector<8x128xf32> to vector<8x32xf32>
    %188 = arith.negf %187 : vector<8x32xf32>
    %189 = math.exp %188 : vector<8x32xf32>
    %cst_49 = arith.constant 1.000000e+00 : f32
    %190 = vector.broadcast %cst_49 : f32 to vector<8x32xf32>
    %191 = arith.addf %190, %189 : vector<8x32xf32>
    %192 = arith.divf %190, %191 : vector<8x32xf32>
    %193 = vector.extract_strided_slice %186 {offsets = [0, 32], sizes = [8, 32], strides = [1, 1]} : vector<8x128xf32> to vector<8x32xf32>
    %194 = arith.negf %193 : vector<8x32xf32>
    %195 = math.exp %194 : vector<8x32xf32>
    %cst_50 = arith.constant 1.000000e+00 : f32
    %196 = vector.broadcast %cst_50 : f32 to vector<8x32xf32>
    %197 = arith.addf %196, %195 : vector<8x32xf32>
    %198 = arith.divf %196, %197 : vector<8x32xf32>
    %199 = vector.extract_strided_slice %186 {offsets = [0, 64], sizes = [8, 32], strides = [1, 1]} : vector<8x128xf32> to vector<8x32xf32>
    %200 = math.tanh %199 : vector<8x32xf32>
    %201 = vector.extract_strided_slice %186 {offsets = [0, 96], sizes = [8, 32], strides = [1, 1]} : vector<8x128xf32> to vector<8x32xf32>
    %202 = arith.negf %201 : vector<8x32xf32>
    %203 = math.exp %202 : vector<8x32xf32>
    %cst_51 = arith.constant 1.000000e+00 : f32
    %204 = vector.broadcast %cst_51 : f32 to vector<8x32xf32>
    %205 = arith.addf %204, %203 : vector<8x32xf32>
    %206 = arith.divf %204, %205 : vector<8x32xf32>
    %207 = arith.mulf %198, %174 : vector<8x32xf32>
    %208 = arith.mulf %192, %200 : vector<8x32xf32>
    %209 = arith.addf %207, %208 : vector<8x32xf32>
    %210 = math.tanh %209 : vector<8x32xf32>
    %211 = arith.mulf %206, %210 : vector<8x32xf32>
    %212 = arith.index_cast %c5_i32 : i32 to index
    %c0_52 = arith.constant 0 : index
    %c0_53 = arith.constant 0 : index
    %213 = vector.load %arg5[%212, %c0_52, %c0_53] : memref<8x8x32xf32, #tpu.memory_space<vmem>>, vector<1x8x32xf32>
    %214 = vector.shape_cast %213 : vector<1x8x32xf32> to vector<8x32xf32>
    %215 = vector.shape_cast %211 : vector<8x32xf32> to vector<1x8x32xf32>
    tpu.vector_store %arg5[%212, %c0_52, %c0_53], %215 {strides = array<i32>} : memref<8x8x32xf32, #tpu.memory_space<vmem>>, vector<1x8x32xf32>,
    %c6_i32 = arith.constant 6 : i32
    %216 = arith.index_cast %c6_i32 : i32 to index
    %c0_54 = arith.constant 0 : index
    %c0_55 = arith.constant 0 : index
    %217 = vector.load %arg1[%216, %c0_54, %c0_55] : memref<8x8x128xf32, #tpu.memory_space<vmem>>, vector<1x8x128xf32>
    %218 = vector.shape_cast %217 : vector<1x8x128xf32> to vector<8x128xf32>
    %219 = arith.truncf %211 : vector<8x32xf32> to vector<8x32xbf16>
    %cst_56 = arith.constant dense<0.000000e+00> : vector<8x128xf32>
    %220 = tpu.matmul %219, %3, %cst_56 {dimension_numbers = #tpu.dot_dimension_numbers<[1], [0], [0], [1], [0, 0, 1, 1], [], []>} : vector<8x32xbf16>, vector<32x128xbf16>, vector<8x128xf32> -> vector<8x128xf32>
    %221 = arith.addf %218, %220 : vector<8x128xf32>
    %222 = vector.extract_strided_slice %221 {offsets = [0, 0], sizes = [8, 32], strides = [1, 1]} : vector<8x128xf32> to vector<8x32xf32>
    %223 = arith.negf %222 : vector<8x32xf32>
    %224 = math.exp %223 : vector<8x32xf32>
    %cst_57 = arith.constant 1.000000e+00 : f32
    %225 = vector.broadcast %cst_57 : f32 to vector<8x32xf32>
    %226 = arith.addf %225, %224 : vector<8x32xf32>
    %227 = arith.divf %225, %226 : vector<8x32xf32>
    %228 = vector.extract_strided_slice %221 {offsets = [0, 32], sizes = [8, 32], strides = [1, 1]} : vector<8x128xf32> to vector<8x32xf32>
    %229 = arith.negf %228 : vector<8x32xf32>
    %230 = math.exp %229 : vector<8x32xf32>
    %cst_58 = arith.constant 1.000000e+00 : f32
    %231 = vector.broadcast %cst_58 : f32 to vector<8x32xf32>
    %232 = arith.addf %231, %230 : vector<8x32xf32>
    %233 = arith.divf %231, %232 : vector<8x32xf32>
    %234 = vector.extract_strided_slice %221 {offsets = [0, 64], sizes = [8, 32], strides = [1, 1]} : vector<8x128xf32> to vector<8x32xf32>
    %235 = math.tanh %234 : vector<8x32xf32>
    %236 = vector.extract_strided_slice %221 {offsets = [0, 96], sizes = [8, 32], strides = [1, 1]} : vector<8x128xf32> to vector<8x32xf32>
    %237 = arith.negf %236 : vector<8x32xf32>
    %238 = math.exp %237 : vector<8x32xf32>
    %cst_59 = arith.constant 1.000000e+00 : f32
    %239 = vector.broadcast %cst_59 : f32 to vector<8x32xf32>
    %240 = arith.addf %239, %238 : vector<8x32xf32>
    %241 = arith.divf %239, %240 : vector<8x32xf32>
    %242 = arith.mulf %233, %209 : vector<8x32xf32>
    %243 = arith.mulf %227, %235 : vector<8x32xf32>
    %244 = arith.addf %242, %243 : vector<8x32xf32>
    %245 = math.tanh %244 : vector<8x32xf32>
    %246 = arith.mulf %241, %245 : vector<8x32xf32>
    %247 = arith.index_cast %c6_i32 : i32 to index
    %c0_60 = arith.constant 0 : index
    %c0_61 = arith.constant 0 : index
    %248 = vector.load %arg5[%247, %c0_60, %c0_61] : memref<8x8x32xf32, #tpu.memory_space<vmem>>, vector<1x8x32xf32>
    %249 = vector.shape_cast %248 : vector<1x8x32xf32> to vector<8x32xf32>
    %250 = vector.shape_cast %246 : vector<8x32xf32> to vector<1x8x32xf32>
    tpu.vector_store %arg5[%247, %c0_60, %c0_61], %250 {strides = array<i32>} : memref<8x8x32xf32, #tpu.memory_space<vmem>>, vector<1x8x32xf32>,
    %c7_i32 = arith.constant 7 : i32
    %251 = arith.index_cast %c7_i32 : i32 to index
    %c0_62 = arith.constant 0 : index
    %c0_63 = arith.constant 0 : index
    %252 = vector.load %arg1[%251, %c0_62, %c0_63] : memref<8x8x128xf32, #tpu.memory_space<vmem>>, vector<1x8x128xf32>
    %253 = vector.shape_cast %252 : vector<1x8x128xf32> to vector<8x128xf32>
    %254 = arith.truncf %246 : vector<8x32xf32> to vector<8x32xbf16>
    %cst_64 = arith.constant dense<0.000000e+00> : vector<8x128xf32>
    %255 = tpu.matmul %254, %3, %cst_64 {dimension_numbers = #tpu.dot_dimension_numbers<[1], [0], [0], [1], [0, 0, 1, 1], [], []>} : vector<8x32xbf16>, vector<32x128xbf16>, vector<8x128xf32> -> vector<8x128xf32>
    %256 = arith.addf %253, %255 : vector<8x128xf32>
    %257 = vector.extract_strided_slice %256 {offsets = [0, 0], sizes = [8, 32], strides = [1, 1]} : vector<8x128xf32> to vector<8x32xf32>
    %258 = arith.negf %257 : vector<8x32xf32>
    %259 = math.exp %258 : vector<8x32xf32>
    %cst_65 = arith.constant 1.000000e+00 : f32
    %260 = vector.broadcast %cst_65 : f32 to vector<8x32xf32>
    %261 = arith.addf %260, %259 : vector<8x32xf32>
    %262 = arith.divf %260, %261 : vector<8x32xf32>
    %263 = vector.extract_strided_slice %256 {offsets = [0, 32], sizes = [8, 32], strides = [1, 1]} : vector<8x128xf32> to vector<8x32xf32>
    %264 = arith.negf %263 : vector<8x32xf32>
    %265 = math.exp %264 : vector<8x32xf32>
    %cst_66 = arith.constant 1.000000e+00 : f32
    %266 = vector.broadcast %cst_66 : f32 to vector<8x32xf32>
    %267 = arith.addf %266, %265 : vector<8x32xf32>
    %268 = arith.divf %266, %267 : vector<8x32xf32>
    %269 = vector.extract_strided_slice %256 {offsets = [0, 64], sizes = [8, 32], strides = [1, 1]} : vector<8x128xf32> to vector<8x32xf32>
    %270 = math.tanh %269 : vector<8x32xf32>
    %271 = vector.extract_strided_slice %256 {offsets = [0, 96], sizes = [8, 32], strides = [1, 1]} : vector<8x128xf32> to vector<8x32xf32>
    %272 = arith.negf %271 : vector<8x32xf32>
    %273 = math.exp %272 : vector<8x32xf32>
    %cst_67 = arith.constant 1.000000e+00 : f32
    %274 = vector.broadcast %cst_67 : f32 to vector<8x32xf32>
    %275 = arith.addf %274, %273 : vector<8x32xf32>
    %276 = arith.divf %274, %275 : vector<8x32xf32>
    %277 = arith.mulf %268, %244 : vector<8x32xf32>
    %278 = arith.mulf %262, %270 : vector<8x32xf32>
    %279 = arith.addf %277, %278 : vector<8x32xf32>
    %280 = math.tanh %279 : vector<8x32xf32>
    %281 = arith.mulf %276, %280 : vector<8x32xf32>
    %282 = arith.index_cast %c7_i32 : i32 to index
    %c0_68 = arith.constant 0 : index
    %c0_69 = arith.constant 0 : index
    %283 = vector.load %arg5[%282, %c0_68, %c0_69] : memref<8x8x32xf32, #tpu.memory_space<vmem>>, vector<1x8x32xf32>
    %284 = vector.shape_cast %283 : vector<1x8x32xf32> to vector<8x32xf32>
    %285 = vector.shape_cast %281 : vector<8x32xf32> to vector<1x8x32xf32>
    tpu.vector_store %arg5[%282, %c0_68, %c0_69], %285 {strides = array<i32>} : memref<8x8x32xf32, #tpu.memory_space<vmem>>, vector<1x8x32xf32>,
    %c8_i32 = arith.constant 8 : i32
    %c0_70 = arith.constant 0 : index
    %c0_71 = arith.constant 0 : index
    %286 = vector.load %arg6[%c0_70, %c0_71] : memref<8x32xf32, #tpu.memory_space<vmem>>, vector<8x32xf32>
    tpu.vector_store %arg6[%c0_70, %c0_71], %281 {strides = array<i32>} : memref<8x32xf32, #tpu.memory_space<vmem>>, vector<8x32xf32>,
    %c0_72 = arith.constant 0 : index
    %c0_73 = arith.constant 0 : index
    %287 = vector.load %arg7[%c0_72, %c0_73] : memref<8x32xf32, #tpu.memory_space<vmem>>, vector<8x32xf32>
    tpu.vector_store %arg7[%c0_72, %c0_73], %279 {strides = array<i32>} : memref<8x32xf32, #tpu.memory_space<vmem>>, vector<8x32xf32>,
    return
  }
  func.func @transform_0(%arg0: i32) -> (i32, i32, i32) {
    %c0_i32 = arith.constant 0 : i32
    %c0_i32_0 = arith.constant 0 : i32
    %c0_i32_1 = arith.constant 0 : i32
    return %arg0, %c0_i32, %c0_i32_0 : i32, i32, i32
  }
  func.func @transform_1(%arg0: i32) -> (i32, i32) {
    %c0_i32 = arith.constant 0 : i32
    %c0_i32_0 = arith.constant 0 : i32
    %c0_i32_1 = arith.constant 0 : i32
    return %c0_i32, %c0_i32_0 : i32, i32
  }
  func.func @transform_2(%arg0: i32) -> (i32, i32) {
    %c0_i32 = arith.constant 0 : i32
    %c0_i32_0 = arith.constant 0 : i32
    %c0_i32_1 = arith.constant 0 : i32
    return %c0_i32, %c0_i32_0 : i32, i32
  }
  func.func @transform_3(%arg0: i32) -> (i32, i32) {
    %c0_i32 = arith.constant 0 : i32
    %c0_i32_0 = arith.constant 0 : i32
    %c0_i32_1 = arith.constant 0 : i32
    return %c0_i32, %c0_i32_0 : i32, i32
  }
  func.func @transform_4(%arg0: i32) -> (i32, i32, i32) {
    %c0_i32 = arith.constant 0 : i32
    %c0_i32_0 = arith.constant 0 : i32
    %c0_i32_1 = arith.constant 0 : i32
    return %arg0, %c0_i32, %c0_i32_0 : i32, i32, i32
  }
}

module attributes {stable_mosaic.version = 11 : i64} {
  func.func @_matmul_bias_kernel(%arg0: i32, %arg1: i32, %arg2: memref<64x32xbf16, #tpu.memory_space<vmem>>, %arg3: memref<32x64xbf16, #tpu.memory_space<vmem>>, %arg4: memref<1x64xf32, #tpu.memory_space<vmem>>, %arg5: memref<64x64xf32, #tpu.memory_space<vmem>>) attributes {dimension_semantics = [#tpu.dimension_semantics<parallel>, #tpu.dimension_semantics<parallel>], iteration_bounds = array<i64: 1, 1>, scalar_prefetch = 0 : i64, scratch_operands = 0 : i64, tpu.core_type = #tpu.core_type<tc>, window_params = [{transform_indices = @transform_0, window_bounds = array<i64: 64, 32>}, {transform_indices = @transform_1, window_bounds = array<i64: 32, 64>}, {transform_indices = @transform_2, window_bounds = array<i64: 1, 64>}, {transform_indices = @transform_3, window_bounds = array<i64: 64, 64>}]} {
    %c0 = arith.constant 0 : index
    %c0_0 = arith.constant 0 : index
    %0 = vector.load %arg2[%c0, %c0_0] : memref<64x32xbf16, #tpu.memory_space<vmem>>, vector<64x32xbf16>
    %c0_1 = arith.constant 0 : index
    %c0_2 = arith.constant 0 : index
    %1 = vector.load %arg3[%c0_1, %c0_2] : memref<32x64xbf16, #tpu.memory_space<vmem>>, vector<32x64xbf16>
    %cst = arith.constant dense<0.000000e+00> : vector<64x64xf32>
    %2 = tpu.matmul %0, %1, %cst {dimension_numbers = #tpu.dot_dimension_numbers<[1], [0], [0], [1], [0, 0, 1, 1], [], []>} : vector<64x32xbf16>, vector<32x64xbf16>, vector<64x64xf32> -> vector<64x64xf32>
    %c0_3 = arith.constant 0 : index
    %c0_4 = arith.constant 0 : index
    %3 = vector.load %arg4[%c0_3, %c0_4] : memref<1x64xf32, #tpu.memory_space<vmem>>, vector<1x64xf32>
    %4 = vector.broadcast %3 : vector<1x64xf32> to vector<64x64xf32>
    %5 = arith.addf %2, %4 : vector<64x64xf32>
    %c0_5 = arith.constant 0 : index
    %c0_6 = arith.constant 0 : index
    %6 = vector.load %arg5[%c0_5, %c0_6] : memref<64x64xf32, #tpu.memory_space<vmem>>, vector<64x64xf32>
    tpu.vector_store %arg5[%c0_5, %c0_6], %5 {strides = array<i32>} : memref<64x64xf32, #tpu.memory_space<vmem>>, vector<64x64xf32>,
    return
  }
  func.func @transform_0(%arg0: i32, %arg1: i32) -> (i32, i32) {
    %c0_i32 = arith.constant 0 : i32
    %c0_i32_0 = arith.constant 0 : i32
    return %arg0, %c0_i32 : i32, i32
  }
  func.func @transform_1(%arg0: i32, %arg1: i32) -> (i32, i32) {
    %c0_i32 = arith.constant 0 : i32
    %c0_i32_0 = arith.constant 0 : i32
    return %c0_i32, %arg1 : i32, i32
  }
  func.func @transform_2(%arg0: i32, %arg1: i32) -> (i32, i32) {
    %c0_i32 = arith.constant 0 : i32
    %c0_i32_0 = arith.constant 0 : i32
    return %c0_i32, %arg1 : i32, i32
  }
  func.func @transform_3(%arg0: i32, %arg1: i32) -> (i32, i32) {
    %c0_i32 = arith.constant 0 : i32
    return %arg0, %arg1 : i32, i32
  }
}

</mosaic_0001>

<bundles_post_ra>
// kernel: nmt_forward.9
= control target key start
LH: loop header
LB: loop body
LE: loop exit
PB: predicated region body
PF: predicated region fallthrough
CT: control target
= control target key end

     0   :  { %8 = vsyncpa [#allocation3], 0  ;;  %s443_s0 = inlined_call_operand.hbm [shape: bf16[64,32], index: 0, kind: input, shape index: {}]   ;;  %s444_s1 = inlined_call_operand.hbm [shape: bf16[32,64], index: 1, kind: input, shape index: {}]   ;;  %s445_s2 = inlined_call_operand.hbm [shape: f32[1,64], index: 2, kind: input, shape index: {}]   ;;  %s446_s3 = inlined_call_operand.hbm [shape: f32[64,64], index: 3, kind: output, shape index: {}]  }
   0x1   :  { %9 = vsyncpa [#allocation6], 0 }
   0x2   :  { %10 = vsyncpa [#allocation4], 0  ;;  %s352_s12 = smov [#allocation5]   ;;  %s353_s14 = smov [#allocation2]  }
   0x3   :  { %s28_s13 = sshll.u32 %s352_s12, 4  ;;  %s16_s15 = sshll.u32 %s353_s14, 4  ;;  %s29_s13 = int_to_ptr.vmem [resolvable:$true] %s28_s13  ;;  %s380_s15 = int_to_ptr.vmem [resolvable:$true] %s16_s15 }
   0x4   :  { %s258_s18 = scalar_lea.hbm %s444_s1, 256 }
   0x5   :  { %p259_p0 = scmp.ne.s32.totalorder %s444_s1, %s258_s18  ;;  %p262_p1 = scmp.lt.u32.totalorder %s258_s18, %s444_s1 }
   0x7   :  { %p264_p2 = pnand %p262_p1, %p259_p0 }
   0x9   :  { %267 = shalt.err (!%p264_p2)
}
   0xa   :  { %s268_s23 = scalar_lea.vmem %s29_s13, 256  ;;  %p273_p4 = scmp.lt.s32.totalorder %s29_s13, %s29_s13 }
   0xb   :  { %p269_p3 = scmp.ne.s32.totalorder %s29_s13, %s268_s23  ;;  %p274_p5 = scmp.lt.s32.totalorder %s268_s23, %s268_s23 }
   0xd   :  { %p275_p6 = por %p274_p5, %p273_p4 }
   0xf   :  { %p276_p7 = pnand %p275_p6, %p269_p3 }
  0x11   :  { %279 = shalt.err (!%p276_p7)
}
  0x12   :  { %s354_s24 = smov 64   ;;  %s355_s25 = smov 4  }
  0x13   :  { %34 = dma.hbm_to_vmem [thread:$0]  %s444_s1, 256, %s29_s13, [#allocation6], %s354_s24, %s354_s24, %s355_s25  }
  0x14   :  { %s280_s30 = scalar_lea.hbm %s443_s0, 512 }
  0x15   :  { %p281_p8 = scmp.ne.s32.totalorder %s443_s0, %s280_s30  ;;  %p284_p9 = scmp.lt.u32.totalorder %s280_s30, %s443_s0 }
  0x17   :  { %p286_p10 = pnand %p284_p9, %p281_p8 }
  0x19   :  { %289 = shalt.err (!%p286_p10)
}
  0x1a   :  { %s290_s8 = scalar_lea.vmem %s380_s15, 512  ;;  %p295_p12 = scmp.lt.s32.totalorder %s380_s15, %s380_s15 }
  0x1b   :  { %p291_p11 = scmp.ne.s32.totalorder %s380_s15, %s290_s8  ;;  %p296_p13 = scmp.lt.s32.totalorder %s290_s8, %s290_s8 }
  0x1d   :  { %p297_p0 = por %p296_p13, %p295_p12 }
  0x1f   :  { %p298_p1 = pnand %p297_p0, %p291_p11 }
  0x21   :  { %301 = shalt.err (!%p298_p1)
}
  0x22   :  { %22 = dma.hbm_to_vmem [thread:$0]  %s443_s0, 512, %s380_s15, [#allocation3], %s354_s24, %s354_s24, %s355_s25  }
  0x23   :  { %s356_s10 = smov [#allocation7]   ;;  %s302_s14 = scalar_lea.hbm %s445_s2, 16 }
  0x24   :  { %s41_s11 = sshll.u32 %s356_s10, 4  ;;  %p303_p2 = scmp.ne.s32.totalorder %s445_s2, %s302_s14  ;;  %s42_s11 = int_to_ptr.vmem [resolvable:$true] %s41_s11 }
  0x25   :  { %p306_p3 = scmp.lt.u32.totalorder %s302_s14, %s445_s2 }
  0x27   :  { %p308_p4 = pnand %p306_p3, %p303_p2 }
  0x29   :  { %311 = shalt.err (!%p308_p4)
}
  0x2a   :  { %s312_s20 = scalar_lea.vmem %s42_s11, 16  ;;  %s316_s0 = scalar_lea.vmem %s42_s11, 32 }
  0x2b   :  { %p313_p5 = scmp.ne.s32.totalorder %s42_s11, %s312_s20  ;;  %p317_p6 = scmp.lt.s32.totalorder %s42_s11, %s42_s11 }
  0x2c   :  { %p318_p7 = scmp.lt.s32.totalorder %s316_s0, %s312_s20 }
  0x2e   :  { %p319_p8 = por %p318_p7, %p317_p6 }
  0x30   :  { %p320_p9 = pnand %p319_p8, %p313_p5 }
  0x32   :  { %323 = shalt.err (!%p320_p9)
}
  0x33   :  { %44 = dma.hbm_to_vmem [thread:$0]  %s445_s2, 16, %s42_s11, [#allocation6]  }
  0x34   :  { %346 = dma.done.wait [#allocation3], 512  }
  0x35   :  { %347 = vsyncadd [#allocation3], 4294966784 }
  0x36   :  { %348 = dma.done.wait [#allocation6], 272  }
  0x37   :  { %349 = vsyncadd [#allocation6], 4294967024  ;;  %v252_v0 = vld [vmem:[#allocation5] sm:$0xff]   ;;  %v253_v1 = vld [vmem:[#allocation5 + $0x8] sm:$0xff]   ;;  %vm106_vm0 = vcmask 261120   ;;  %vm184_vm1 = vcmask 523264  }
  0x38   :  { %228 = vmatprep.subr.bf16.mxu0 %v252_v0  ;;  %240 = vmatprep.subr.bf16.mxu1 %v252_v0  ;;  %v254_v2 = vld [vmem:[#allocation2] sm:$0xff]   ;;  %v255_v3 = vld [vmem:[#allocation2 + $0x10] sm:$0xff]   ;;  %v256_v4 = vld [vmem:[#allocation2 + $0x8] sm:$0xff]   ;;  %s357_s2 = smov [#allocation8]  }
  0x39   :  { %229 = vmatpush3.bf16.msra.mxu0 %v252_v0  ;;  %242 = vmatpush3.bf16.msra.mxu1 %v252_v0  ;;  %v257_v5 = vld [vmem:[#allocation2 + $0x18] sm:$0xff]   ;;  %v211_v6 = vld [vmem:[#allocation7] ss:$0 sm:$0xff]  ;;  %s198_s22 = sshll.u32 %s357_s2, 4  ;;  %s199_s22 = int_to_ptr.vmem [resolvable:$true] %s198_s22 }
  0x3a   :  { %230 = vmatprep.subr.bf16.mxu0 %v253_v1  ;;  %241 = vmatprep.subr.bf16.mxu1 %v253_v1  ;;  %s324_s23 = scalar_lea.vmem %s199_s22, 1024  ;;  %p329_p11 = scmp.lt.s32.totalorder %s199_s22, %s199_s22 }
  0x3b   :  { %232 = vmatprep.mubr.msk.bf16.mxu0 %vm106_vm0, %v254_v2  ;;  %236 = vmatprep.mubr.msk.bf16.mxu1 %vm106_vm0, %v255_v3  ;;  %p325_p10 = scmp.ne.s32.totalorder %s199_s22, %s324_s23  ;;  %p330_p12 = scmp.lt.s32.totalorder %s324_s23, %s324_s23 }
  0x3d   :  { %231 = vmatpush3.bf16.msra.mxu0 %v253_v1  ;;  %243 = vmatpush3.bf16.msra.mxu1 %v253_v1  ;;  %p331_p13 = por %p330_p12, %p329_p11 }
  0x3f   :  { %p332_p0 = pnand %p331_p13, %p325_p10 }
  0x40   :  { %233 = vmatmul.mubr.msk.bf16.vlgmr.msra.gmra.mrb[0].mxu0 %vm106_vm0, %v256_v4  ;;  %237 = vmatmul.mubr.msk.bf16.vlgmr.msra.gmra.mrb[0].mxu1 %vm106_vm0, %v257_v5 }
 0x113   :  { %v234_v7 = vpop.f32.mrb[0].mxu0  ;;  %v238_v8 = vpop.f32.mrb[0].mxu1 }
 0x114   :  { %v162_v9 = vadd.f32 %v234_v7, %v211_v6  ;;  %v178_v10 = vadd.f32 %v238_v8, %v211_v6  ;;  %v153_v11 = vpop.f32.mrb[1].mxu0  ;;  %v169_v12 = vpop.f32.mrb[1].mxu1 }
 0x115   :  { %v154_v13 = vadd.f32 %v211_v6, %v153_v11  ;;  %v170_v14 = vadd.f32 %v211_v6, %v169_v12  ;;  %v235_v15 = vpop.f32.mrb[2].mxu0  ;;  %v239_v16 = vpop.f32.mrb[2].mxu1 }
 0x116   :  { %187 = vst.msk [vmem:[#allocation8 + $0x10] sm:$0xff] %vm184_vm1, %v162_v9  ;;  %191 = vst.msk [vmem:[#allocation8 + $0x30] sm:$0xff] %vm184_vm1, %v178_v10  ;;  %v165_v17 = vadd.f32 %v235_v15, %v211_v6  ;;  %v181_v18 = vadd.f32 %v239_v16, %v211_v6  ;;  %v156_v19 = vpop.f32.mrb[3].mxu0  ;;  %v172_v20 = vpop.f32.mrb[3].mxu1 }
 0x117   :  { %185 = vst.msk [vmem:[#allocation8] sm:$0xff] %vm184_vm1, %v154_v13  ;;  %189 = vst.msk [vmem:[#allocation8 + $0x20] sm:$0xff] %vm184_vm1, %v170_v14  ;;  %v157_v21 = vadd.f32 %v211_v6, %v156_v19  ;;  %v173_v22 = vadd.f32 %v211_v6, %v172_v20 }
 0x118   :  { %188 = vst.msk [vmem:[#allocation8 + $0x18] sm:$0xff] %vm184_vm1, %v165_v17  ;;  %192 = vst.msk [vmem:[#allocation8 + $0x38] sm:$0xff] %vm184_vm1, %v181_v18 }
 0x119   :  { %186 = vst.msk [vmem:[#allocation8 + $0x8] sm:$0xff] %vm184_vm1, %v157_v21  ;;  %190 = vst.msk [vmem:[#allocation8 + $0x28] sm:$0xff] %vm184_vm1, %v173_v22 }
 0x11a   :  { %335 = shalt.err (!%p332_p0)
}
 0x11b   :  { %s336_s26 = scalar_lea.hbm %s446_s3, 1024 }
 0x11c   :  { %p337_p1 = scmp.ne.s32.totalorder %s446_s3, %s336_s26  ;;  %p340_p2 = scmp.lt.u32.totalorder %s336_s26, %s446_s3 }
 0x11e   :  { %p342_p3 = pnand %p340_p2, %p337_p1 }
 0x120   :  { %345 = shalt.err (!%p342_p3)
}
 0x121   :  { %s358_s4 = smov 128   ;;  %s359_s5 = smov 8  }
 0x122   :  { %204 = dma.vmem_to_hbm [thread:$0]  %s199_s22, 1024, %s446_s3, [#allocation4], %s358_s4, %s358_s4, %s359_s5  }
 0x123   :  { %350 = dma.done.wait [#allocation4], 1024  }
 0x124   :  { %351 = vsyncadd [#allocation4], 4294966272 }
 0x125   :  { %208 = vsyncpa [#allocation3], 1 }
 0x126   :  { %209 = vsyncpa [#allocation6], 1 }
 0x127   :  { %210 = vsyncpa [#allocation4], 1 }

// kernel: nmt_forward.5
= control target key start
LH: loop header
LB: loop body
LE: loop exit
PB: predicated region body
PF: predicated region fallthrough
CT: control target
= control target key end

     0   :  { %8 = vsyncpa [#allocation3], 0  ;;  %s434_s0 = inlined_call_operand.hbm [shape: bf16[64,32], index: 0, kind: input, shape index: {}]   ;;  %s435_s1 = inlined_call_operand.hbm [shape: bf16[32,128], index: 1, kind: input, shape index: {}]   ;;  %s436_s2 = inlined_call_operand.hbm [shape: f32[1,128], index: 2, kind: input, shape index: {}]   ;;  %s437_s3 = inlined_call_operand.hbm [shape: f32[64,128], index: 3, kind: output, shape index: {}]  }
   0x1   :  { %9 = vsyncpa [#allocation6], 0 }
   0x2   :  { %10 = vsyncpa [#allocation4], 0  ;;  %s351_s12 = smov [#allocation5]   ;;  %s352_s14 = smov [#allocation2]  }
   0x3   :  { %s28_s13 = sshll.u32 %s351_s12, 4  ;;  %s16_s15 = sshll.u32 %s352_s14, 4  ;;  %s29_s13 = int_to_ptr.vmem [resolvable:$true] %s28_s13  ;;  %s379_s15 = int_to_ptr.vmem [resolvable:$true] %s16_s15 }
   0x4   :  { %s257_s18 = scalar_lea.hbm %s435_s1, 256 }
   0x5   :  { %p258_p0 = scmp.ne.s32.totalorder %s435_s1, %s257_s18  ;;  %p261_p1 = scmp.lt.u32.totalorder %s257_s18, %s435_s1 }
   0x7   :  { %p263_p2 = pnand %p261_p1, %p258_p0 }
   0x9   :  { %266 = shalt.err (!%p263_p2)
}
   0xa   :  { %s267_s23 = scalar_lea.vmem %s29_s13, 256  ;;  %p272_p4 = scmp.lt.s32.totalorder %s29_s13, %s29_s13 }
   0xb   :  { %p268_p3 = scmp.ne.s32.totalorder %s29_s13, %s267_s23  ;;  %p273_p5 = scmp.lt.s32.totalorder %s267_s23, %s267_s23 }
   0xd   :  { %p274_p6 = por %p273_p5, %p272_p4 }
   0xf   :  { %p275_p7 = pnand %p274_p6, %p268_p3 }
  0x11   :  { %278 = shalt.err (!%p275_p7)
}
  0x12   :  { %s353_s24 = smov 64   ;;  %s354_s25 = smov 4  }
  0x13   :  { %34 = dma.hbm_to_vmem [thread:$0]  %s435_s1, 256, %s29_s13, [#allocation6], %s353_s24, %s353_s24, %s354_s25  }
  0x14   :  { %s279_s30 = scalar_lea.hbm %s434_s0, 512 }
  0x15   :  { %p280_p8 = scmp.ne.s32.totalorder %s434_s0, %s279_s30  ;;  %p283_p9 = scmp.lt.u32.totalorder %s279_s30, %s434_s0 }
  0x17   :  { %p285_p10 = pnand %p283_p9, %p280_p8 }
  0x19   :  { %288 = shalt.err (!%p285_p10)
}
  0x1a   :  { %s289_s8 = scalar_lea.vmem %s379_s15, 512  ;;  %p294_p12 = scmp.lt.s32.totalorder %s379_s15, %s379_s15 }
  0x1b   :  { %p290_p11 = scmp.ne.s32.totalorder %s379_s15, %s289_s8  ;;  %p295_p13 = scmp.lt.s32.totalorder %s289_s8, %s289_s8 }
  0x1d   :  { %p296_p0 = por %p295_p13, %p294_p12 }
  0x1f   :  { %p297_p1 = pnand %p296_p0, %p290_p11 }
  0x21   :  { %300 = shalt.err (!%p297_p1)
}
  0x22   :  { %22 = dma.hbm_to_vmem [thread:$0]  %s434_s0, 512, %s379_s15, [#allocation3], %s353_s24, %s353_s24, %s354_s25  }
  0x23   :  { %s355_s10 = smov [#allocation7]   ;;  %s301_s14 = scalar_lea.hbm %s436_s2, 16 }
  0x24   :  { %s41_s11 = sshll.u32 %s355_s10, 4  ;;  %p302_p2 = scmp.ne.s32.totalorder %s436_s2, %s301_s14  ;;  %s42_s11 = int_to_ptr.vmem [resolvable:$true] %s41_s11 }
  0x25   :  { %p305_p3 = scmp.lt.u32.totalorder %s301_s14, %s436_s2 }
  0x27   :  { %p307_p4 = pnand %p305_p3, %p302_p2 }
  0x29   :  { %310 = shalt.err (!%p307_p4)
}
  0x2a   :  { %s311_s20 = scalar_lea.vmem %s42_s11, 16  ;;  %s315_s0 = scalar_lea.vmem %s42_s11, 32 }
  0x2b   :  { %p312_p5 = scmp.ne.s32.totalorder %s42_s11, %s311_s20  ;;  %p316_p6 = scmp.lt.s32.totalorder %s42_s11, %s42_s11 }
  0x2c   :  { %p317_p7 = scmp.lt.s32.totalorder %s315_s0, %s311_s20 }
  0x2e   :  { %p318_p8 = por %p317_p7, %p316_p6 }
  0x30   :  { %p319_p9 = pnand %p318_p8, %p312_p5 }
  0x32   :  { %322 = shalt.err (!%p319_p9)
}
  0x33   :  { %44 = dma.hbm_to_vmem [thread:$0]  %s436_s2, 16, %s42_s11, [#allocation6]  }
  0x34   :  { %345 = dma.done.wait [#allocation3], 512  }
  0x35   :  { %346 = vsyncadd [#allocation3], 4294966784 }
  0x36   :  { %347 = dma.done.wait [#allocation6], 272  }
  0x37   :  { %348 = vsyncadd [#allocation6], 4294967024  ;;  %v251_v0 = vld [vmem:[#allocation5] sm:$0xff]   ;;  %v252_v1 = vld [vmem:[#allocation5 + $0x8] sm:$0xff]   ;;  %vm106_vm0 = vcmask 261120   ;;  %s356_s2 = smov [#allocation8]  }
  0x38   :  { %227 = vmatprep.subr.bf16.mxu0 %v251_v0  ;;  %239 = vmatprep.subr.bf16.mxu1 %v251_v0  ;;  %v253_v2 = vld [vmem:[#allocation2] sm:$0xff]   ;;  %v254_v3 = vld [vmem:[#allocation2 + $0x10] sm:$0xff]   ;;  %v255_v4 = vld [vmem:[#allocation2 + $0x8] sm:$0xff]   ;;  %s197_s22 = sshll.u32 %s356_s2, 4  ;;  %s198_s22 = int_to_ptr.vmem [resolvable:$true] %s197_s22 }
  0x39   :  { %228 = vmatpush3.bf16.msra.mxu0 %v251_v0  ;;  %241 = vmatpush3.bf16.msra.mxu1 %v251_v0  ;;  %v256_v5 = vld [vmem:[#allocation2 + $0x18] sm:$0xff]   ;;  %v210_v6 = vld [vmem:[#allocation7] ss:$0 sm:$0xff]  ;;  %s323_s23 = scalar_lea.vmem %s198_s22, 1024  ;;  %p328_p11 = scmp.lt.s32.totalorder %s198_s22, %s198_s22 }
  0x3a   :  { %229 = vmatprep.subr.bf16.mxu0 %v252_v1  ;;  %240 = vmatprep.subr.bf16.mxu1 %v252_v1  ;;  %p324_p10 = scmp.ne.s32.totalorder %s198_s22, %s323_s23  ;;  %p329_p12 = scmp.lt.s32.totalorder %s323_s23, %s323_s23 }
  0x3b   :  { %231 = vmatprep.mubr.msk.bf16.mxu0 %vm106_vm0, %v253_v2  ;;  %235 = vmatprep.mubr.msk.bf16.mxu1 %vm106_vm0, %v254_v3 }
  0x3c   :  { %p330_p13 = por %p329_p12, %p328_p11 }
  0x3d   :  { %230 = vmatpush3.bf16.msra.mxu0 %v252_v1  ;;  %242 = vmatpush3.bf16.msra.mxu1 %v252_v1 }
  0x3e   :  { %p331_p0 = pnand %p330_p13, %p324_p10 }
  0x40   :  { %232 = vmatmul.mubr.msk.bf16.vlgmr.msra.gmra.mrb[0].mxu0 %vm106_vm0, %v255_v4  ;;  %236 = vmatmul.mubr.msk.bf16.vlgmr.msra.gmra.mrb[0].mxu1 %vm106_vm0, %v256_v5 }
 0x113   :  { %v233_v7 = vpop.f32.mrb[0].mxu0  ;;  %v237_v8 = vpop.f32.mrb[0].mxu1 }
 0x114   :  { %v162_v9 = vadd.f32 %v233_v7, %v210_v6  ;;  %v178_v10 = vadd.f32 %v237_v8, %v210_v6  ;;  %v153_v11 = vpop.f32.mrb[1].mxu0  ;;  %v169_v12 = vpop.f32.mrb[1].mxu1 }
 0x115   :  { %v154_v13 = vadd.f32 %v210_v6, %v153_v11  ;;  %v170_v14 = vadd.f32 %v210_v6, %v169_v12  ;;  %v234_v15 = vpop.f32.mrb[2].mxu0  ;;  %v238_v16 = vpop.f32.mrb[2].mxu1 }
 0x116   :  { %186 = vst [vmem:[#allocation8 + $0x10] sm:$0xff] %v162_v9  ;;  %190 = vst [vmem:[#allocation8 + $0x30] sm:$0xff] %v178_v10  ;;  %v165_v17 = vadd.f32 %v234_v15, %v210_v6  ;;  %v181_v18 = vadd.f32 %v238_v16, %v210_v6  ;;  %v156_v19 = vpop.f32.mrb[3].mxu0  ;;  %v172_v20 = vpop.f32.mrb[3].mxu1 }
 0x117   :  { %184 = vst [vmem:[#allocation8] sm:$0xff] %v154_v13  ;;  %188 = vst [vmem:[#allocation8 + $0x20] sm:$0xff] %v170_v14  ;;  %v157_v21 = vadd.f32 %v210_v6, %v156_v19  ;;  %v173_v22 = vadd.f32 %v210_v6, %v172_v20 }
 0x118   :  { %187 = vst [vmem:[#allocation8 + $0x18] sm:$0xff] %v165_v17  ;;  %191 = vst [vmem:[#allocation8 + $0x38] sm:$0xff] %v181_v18 }
 0x119   :  { %185 = vst [vmem:[#allocation8 + $0x8] sm:$0xff] %v157_v21  ;;  %189 = vst [vmem:[#allocation8 + $0x28] sm:$0xff] %v173_v22 }
 0x11a   :  { %334 = shalt.err (!%p331_p0)
}
 0x11b   :  { %s335_s26 = scalar_lea.hbm %s437_s3, 1024 }
 0x11c   :  { %p336_p1 = scmp.ne.s32.totalorder %s437_s3, %s335_s26  ;;  %p339_p2 = scmp.lt.u32.totalorder %s335_s26, %s437_s3 }
 0x11e   :  { %p341_p3 = pnand %p339_p2, %p336_p1 }
 0x120   :  { %344 = shalt.err (!%p341_p3)
}
 0x121   :  { %s357_s4 = smov 128   ;;  %s358_s5 = smov 8  }
 0x122   :  { %203 = dma.vmem_to_hbm [thread:$0]  %s198_s22, 1024, %s437_s3, [#allocation4], %s357_s4, %s357_s4, %s358_s5  }
 0x123   :  { %349 = dma.done.wait [#allocation4], 1024  }
 0x124   :  { %350 = vsyncadd [#allocation4], 4294966272 }
 0x125   :  { %207 = vsyncpa [#allocation3], 1 }
 0x126   :  { %208 = vsyncpa [#allocation6], 1 }
 0x127   :  { %209 = vsyncpa [#allocation4], 1 }

// kernel: nmt_forward.7
= control target key start
LH: loop header
LB: loop body
LE: loop exit
PB: predicated region body
PF: predicated region fallthrough
CT: control target
= control target key end

     0   :  { %9 = vsyncpa [#allocation5], 0  ;;  %s1167_s0 = inlined_call_operand.hbm [shape: f32[8,8,128], index: 0, kind: input, shape index: {}]   ;;  %s1168_s1 = inlined_call_operand.hbm [shape: bf16[32,128], index: 1, kind: input, shape index: {}]   ;;  %s1169_s2 = inlined_call_operand.hbm [shape: f32[8,32], index: 2, kind: output, shape index: {0}]   ;;  %s1170_s3 = inlined_call_operand.hbm [shape: f32[8,32], index: 3, kind: output, shape index: {1}]  }
   0x1   :  { %10 = vsyncpa [#allocation8], 0 }
   0x2   :  { %11 = vsyncpa [#allocation6], 0 }
   0x3   :  { %12 = vsyncpa [#allocation11], 0  ;;  %s984_s12 = smov [#allocation4]   ;;  %s888_s16 = scalar_lea.hbm %s1167_s0, 1024 }
   0x4   :  { %s18_s13 = sshll.u32 %s984_s12, 4  ;;  %p889_p0 = scmp.ne.s32.totalorder %s1167_s0, %s888_s16  ;;  %s19_s13 = int_to_ptr.vmem [resolvable:$true] %s18_s13 }
   0x5   :  { %p892_p1 = scmp.lt.u32.totalorder %s888_s16, %s1167_s0 }
   0x7   :  { %p894_p2 = pnand %p892_p1, %p889_p0 }
   0x9   :  { %897 = shalt.err (!%p894_p2)
}
   0xa   :  { %s898_s21 = scalar_lea.vmem %s19_s13, 1024  ;;  %p903_p4 = scmp.lt.s32.totalorder %s19_s13, %s19_s13 }
   0xb   :  { %p899_p3 = scmp.ne.s32.totalorder %s19_s13, %s898_s21  ;;  %p904_p5 = scmp.lt.s32.totalorder %s898_s21, %s898_s21 }
   0xd   :  { %p905_p6 = por %p904_p5, %p903_p4 }
   0xf   :  { %p906_p7 = pnand %p905_p6, %p899_p3 }
  0x11   :  { %909 = shalt.err (!%p906_p7)
}
  0x12   :  { %s985_s22 = smov 128   ;;  %s986_s23 = smov 8  }
  0x13   :  { %24 = dma.hbm_to_vmem [thread:$0]  %s1167_s0, 1024, %s19_s13, [#allocation5], %s985_s22, %s985_s22, %s986_s23  }
  0x14   :  { %s987_s26 = smov [#allocation7]   ;;  %s910_s30 = scalar_lea.hbm %s1168_s1, 256 }
  0x15   :  { %s30_s27 = sshll.u32 %s987_s26, 4  ;;  %p911_p8 = scmp.ne.s32.totalorder %s1168_s1, %s910_s30  ;;  %s31_s27 = int_to_ptr.vmem [resolvable:$true] %s30_s27 }
  0x16   :  { %p914_p9 = scmp.lt.u32.totalorder %s910_s30, %s1168_s1 }
  0x18   :  { %p916_p10 = pnand %p914_p9, %p911_p8 }
  0x1a   :  { %919 = shalt.err (!%p916_p10)
}
  0x1b   :  { %s920_s8 = scalar_lea.vmem %s31_s27, 256  ;;  %p925_p12 = scmp.lt.s32.totalorder %s31_s27, %s31_s27 }
  0x1c   :  { %p921_p11 = scmp.ne.s32.totalorder %s31_s27, %s920_s8  ;;  %p926_p13 = scmp.lt.s32.totalorder %s920_s8, %s920_s8 }
  0x1e   :  { %p927_p0 = por %p926_p13, %p925_p12 }
  0x20   :  { %p928_p1 = pnand %p927_p0, %p921_p11 }
  0x22   :  { %931 = shalt.err (!%p928_p1)
}
  0x23   :  { %s988_s0 = smov 64   ;;  %s989_s9 = smov 4  }
  0x24   :  { %36 = dma.hbm_to_vmem [thread:$0]  %s1168_s1, 256, %s31_s27, [#allocation8], %s988_s0, %s988_s0, %s989_s9  }
  0x25   :  { %976 = dma.done.wait [#allocation5], 1024  }
  0x26   :  { %977 = vsyncadd [#allocation5], 4294966272 }
  0x27   :  { %978 = dma.done.wait [#allocation8], 256  }
  0x28   :  { %979 = vsyncadd [#allocation8], 4294967040  ;;  %vm48_vm0 = vcmask 261120   ;;  %v990_v0 = vmov 0.0   ;;  %vm991_vm1 = vmmov 0   ;;  %v1052_v1 = vld [vmem:[#allocation7] sm:$0xff]  }
  0x29   :  { %746 = vmatprep.subr.bf16.mxu0 %v990_v0  ;;  %750 = vmatprep.mubr.msk.bf16.mxu0 %vm991_vm1, %v990_v0  ;;  %49 = vst.msk [vmem:[#allocation2] sm:$0xff] %vm48_vm0, %v990_v0  ;;  %50 = vst.msk [vmem:[#allocation3] sm:$0xff] %vm48_vm0, %v990_v0  ;;  %v1055_v2 = vld [vmem:[#allocation7 + $0x8] sm:$0xff]   ;;  %v57_v5 = vld [vmem:[#allocation4] sm:$0xff]  ;;  %s992_s1 = smov 32   ;;  %s993_s12 = smov 96  }
  0x2a   :  { %754 = vmatprep.subr.bf16.mxu1 %v990_v0  ;;  %758 = vmatprep.mubr.msk.bf16.mxu1 %vm991_vm1, %v990_v0  ;;  %v145_v28 = vld [vmem:[#allocation4 + $0x8] sm:$0xff]  ;;  %v219_v49 = vld [vmem:[#allocation4 + $0x10] sm:$0xff]  ;;  %s994_s13 = smov [#allocation10]  }
  0x2b   :  { %747 = vmatpush3.bf16.msra.mxu0 %v1052_v1  ;;  %755 = vmatpush3.bf16.msra.mxu1 %v1052_v1  ;;  %s690_s14 = sshll.u32 %s994_s13, 4  ;;  %s691_s14 = int_to_ptr.vmem [resolvable:$true] %s690_s14 }
  0x2c   :  { %748 = vmatprep.subr.bf16.mxu0 %v990_v0  ;;  %756 = vmatprep.subr.bf16.mxu1 %v990_v0  ;;  %s932_s15 = scalar_lea.vmem %s691_s14, 128  ;;  %p937_p3 = scmp.lt.s32.totalorder %s691_s14, %s691_s14 }
  0x2d   :  { %p933_p2 = scmp.ne.s32.totalorder %s691_s14, %s932_s15  ;;  %p938_p4 = scmp.lt.s32.totalorder %s932_s15, %s932_s15 }
  0x2f   :  { %749 = vmatpush3.bf16.msra.mxu0 %v1055_v2  ;;  %757 = vmatpush3.bf16.msra.mxu1 %v1055_v2  ;;  %p939_p5 = por %p938_p4, %p937_p3 }
  0x30   :  { %v55_v3 = vld [vmem:[#allocation2] sm:$0xff]  ;;  %762 = vmatprep.subr.bf16.mxu0 %v990_v0  ;;  %770 = vmatprep.subr.bf16.mxu1 %v990_v0  ;;  %v56_v12 = vld [vmem:[#allocation3] sm:$0xff] }
  0x31   :  { %v58_v4 = vpack.c.bf16 %v55_v3, %v55_v3  ;;  %p940_p6 = pnand %p939_p5, %p933_p2 }
  0x33   :  { %751 = vmatmul.mubr.msk.bf16.vlgmr.msra.gmra.mrb[0].mxu0 %vm48_vm0, %v58_v4 }
  0x34   :  { %763 = vmatpush3.bf16.msra.mxu0 %v1052_v1  ;;  %766 = vmatprep.mubr.msk.bf16.mxu0 %vm991_vm1, %v990_v0 }
  0x35   :  { %764 = vmatprep.subr.bf16.mxu0 %v990_v0 }
  0x38   :  { %765 = vmatpush3.bf16.msra.mxu0 %v1055_v2 }
  0x39   :  { %778 = vmatprep.subr.bf16.mxu0 %v990_v0 }
 0x106   :  { %v109_v6 = vpop.f32.mrb[0].mxu0 }
 0x107   :  { %v115_v7 = vadd.f32 %v109_v6, %v57_v5  ;;  %v752_v8 = vpop.f32.mrb[1].mxu0 }
 0x108   :  { %v112_v9 = vpop.f32.mrb[2].mxu0 }
 0x109   :  { %v753_v10 = vpop.f32.mrb[3].mxu0  ;;  %824 = vtanh.f32 %v115_v7  ;;  %v707_v13 = vmul.f32 -1.442695, %v115_v7  ;;  %v293_v9 = vld [vmem:[#allocation4 + $0x18] sm:$0xff] }
 0x10b   :  { %826 = vpow2.f32 %v707_v13 }
 0x113   :  { %v825_v11 = vpop.eup %824 }
 0x114   :  { %129 = vrot.lane.b32.xlu0 %v825_v11, %s988_s0 }
 0x115   :  { %v827_v14 = vpop.eup %826 }
 0x116   :  { %v119_v15 = vadd.f32 1.0, %v827_v14 }
 0x118   :  { %124 = vrot.lane.b32.xlu0 %v56_v12, %s992_s1  ;;  %828 = vrcp.f32 %v119_v15 }
 0x122   :  { %v829_v16 = vpop.eup %828 }
 0x186   :  { %v130_v17 = vpop.permute.xlu0 %129 }
 0x187   :  { %v132_v18 = vmul.f32 %v829_v16, %v130_v17 }
 0x189   :  { %134 = vrot.lane.b32.xlu1 %v132_v18, %s992_s1 }
 0x18a   :  { %v125_v19 = vpop.permute.xlu0 %124 }
 0x18b   :  { %v127_v20 = vmul.f32 %v829_v16, %v125_v19 }
 0x1fb   :  { %v135_v21 = vpop.permute.xlu1 %134 }
 0x1fc   :  { %v137_v22 = vadd.f32 %v135_v21, %v127_v20 }
 0x1fe   :  { %830 = vtanh.f32 %v137_v22 }
 0x208   :  { %v831_v23 = vpop.eup %830 }
 0x209   :  { %140 = vrot.lane.b32.xlu1 %v831_v23, %s988_s0 }
 0x27b   :  { %v141_v24 = vpop.permute.xlu1 %140 }
 0x27c   :  { %v143_v25 = vmul.f32 %v829_v16, %v141_v24 }
 0x27e   :  { %v146_v26 = vpack.c.bf16 %v143_v25, %v143_v25 }
 0x280   :  { %148 = vrot.lane.b32.xlu0 %v146_v26, %s992_s1 }
 0x2f2   :  { %v149_v27 = vpop.permute.xlu0 %148 }
 0x2f3   :  { %759 = vmatmul.mubr.msk.bf16.vlgmr.msra.gmra.mrb[0].mxu1 %vm48_vm0, %v149_v27 }
 0x2f4   :  { %771 = vmatpush3.bf16.msra.mxu1 %v1052_v1  ;;  %774 = vmatprep.mubr.msk.bf16.mxu1 %vm991_vm1, %v990_v0 }
 0x2f5   :  { %772 = vmatprep.subr.bf16.mxu1 %v990_v0 }
 0x2f8   :  { %773 = vmatpush3.bf16.msra.mxu1 %v1055_v2 }
 0x2f9   :  { %786 = vmatprep.subr.bf16.mxu1 %v990_v0 }
 0x3c6   :  { %v187_v29 = vpop.f32.mrb[0].mxu1 }
 0x3c7   :  { %v193_v30 = vadd.f32 %v187_v29, %v145_v28  ;;  %v760_v31 = vpop.f32.mrb[1].mxu1 }
 0x3c8   :  { %v190_v32 = vpop.f32.mrb[2].mxu1 }
 0x3c9   :  { %832 = vtanh.f32 %v193_v30  ;;  %v761_v33 = vpop.f32.mrb[3].mxu1  ;;  %v709_v35 = vmul.f32 -1.442695, %v193_v30  ;;  %v367_v30 = vld [vmem:[#allocation4 + $0x20] sm:$0xff] }
 0x3cb   :  { %834 = vpow2.f32 %v709_v35 }
 0x3d3   :  { %v833_v34 = vpop.eup %832 }
 0x3d4   :  { %203 = vrot.lane.b32.xlu1 %v833_v34, %s988_s0 }
 0x3d5   :  { %v835_v36 = vpop.eup %834 }
 0x3d6   :  { %v197_v37 = vadd.f32 1.0, %v835_v36 }
 0x3d8   :  { %836 = vrcp.f32 %v197_v37 }
 0x3e2   :  { %v837_v38 = vpop.eup %836 }
 0x3e3   :  { %v201_v41 = vmul.f32 %v837_v38, %v137_v22 }
 0x446   :  { %v204_v39 = vpop.permute.xlu1 %203 }
 0x447   :  { %v206_v40 = vmul.f32 %v837_v38, %v204_v39 }
 0x449   :  { %208 = vrot.lane.b32.xlu0 %v206_v40, %s992_s1 }
 0x4bb   :  { %v209_v42 = vpop.permute.xlu0 %208 }
 0x4bc   :  { %v211_v43 = vadd.f32 %v209_v42, %v201_v41 }
 0x4be   :  { %838 = vtanh.f32 %v211_v43 }
 0x4c8   :  { %v839_v44 = vpop.eup %838 }
 0x4c9   :  { %214 = vrot.lane.b32.xlu1 %v839_v44, %s988_s0 }
 0x53b   :  { %v215_v45 = vpop.permute.xlu1 %214 }
 0x53c   :  { %v217_v46 = vmul.f32 %v837_v38, %v215_v45 }
 0x53e   :  { %v220_v47 = vpack.c.bf16 %v217_v46, %v217_v46 }
 0x540   :  { %222 = vrot.lane.b32.xlu0 %v220_v47, %s992_s1 }
 0x5b2   :  { %v223_v48 = vpop.permute.xlu0 %222 }
 0x5b3   :  { %767 = vmatmul.mubr.msk.bf16.vlgmr.msra.gmra.mrb[4].mxu0 %vm48_vm0, %v223_v48 }
 0x5b4   :  { %779 = vmatpush3.bf16.msra.mxu0 %v1052_v1  ;;  %782 = vmatprep.mubr.msk.bf16.mxu0 %vm991_vm1, %v990_v0 }
 0x5b5   :  { %780 = vmatprep.subr.bf16.mxu0 %v990_v0 }
 0x5b8   :  { %781 = vmatpush3.bf16.msra.mxu0 %v1055_v2 }
 0x5b9   :  { %794 = vmatprep.subr.bf16.mxu0 %v990_v0 }
 0x686   :  { %v261_v50 = vpop.f32.mrb[4].mxu0 }
 0x687   :  { %v267_v51 = vadd.f32 %v261_v50, %v219_v49  ;;  %v768_v52 = vpop.f32.mrb[5].mxu0 }
 0x688   :  { %v264_v53 = vpop.f32.mrb[6].mxu0 }
 0x689   :  { %840 = vtanh.f32 %v267_v51  ;;  %v769_v54 = vpop.f32.mrb[7].mxu0  ;;  %v711_v56 = vmul.f32 -1.442695, %v267_v51  ;;  %v441_v51 = vld [vmem:[#allocation4 + $0x28] sm:$0xff] }
 0x68b   :  { %842 = vpow2.f32 %v711_v56 }
 0x693   :  { %v841_v55 = vpop.eup %840 }
 0x694   :  { %277 = vrot.lane.b32.xlu1 %v841_v55, %s988_s0 }
 0x695   :  { %v843_v57 = vpop.eup %842 }
 0x696   :  { %v271_v58 = vadd.f32 1.0, %v843_v57 }
 0x698   :  { %844 = vrcp.f32 %v271_v58 }
 0x6a2   :  { %v845_v59 = vpop.eup %844 }
 0x6a3   :  { %v275_v62 = vmul.f32 %v845_v59, %v211_v43 }
 0x706   :  { %v278_v60 = vpop.permute.xlu1 %277 }
 0x707   :  { %v280_v61 = vmul.f32 %v845_v59, %v278_v60 }
 0x709   :  { %282 = vrot.lane.b32.xlu0 %v280_v61, %s992_s1 }
 0x77b   :  { %v283_v63 = vpop.permute.xlu0 %282 }
 0x77c   :  { %v285_v3 = vadd.f32 %v283_v63, %v275_v62 }
 0x77e   :  { %846 = vtanh.f32 %v285_v3 }
 0x788   :  { %v847_v4 = vpop.eup %846 }
 0x789   :  { %288 = vrot.lane.b32.xlu1 %v847_v4, %s988_s0 }
 0x7fb   :  { %v289_v5 = vpop.permute.xlu1 %288 }
 0x7fc   :  { %v291_v6 = vmul.f32 %v845_v59, %v289_v5 }
 0x7fe   :  { %v294_v7 = vpack.c.bf16 %v291_v6, %v291_v6 }
 0x800   :  { %296 = vrot.lane.b32.xlu0 %v294_v7, %s992_s1 }
 0x872   :  { %v297_v8 = vpop.permute.xlu0 %296 }
 0x873   :  { %775 = vmatmul.mubr.msk.bf16.vlgmr.msra.gmra.mrb[4].mxu1 %vm48_vm0, %v297_v8  ;;  %v515_v8 = vld [vmem:[#allocation4 + $0x30] sm:$0xff] }
 0x874   :  { %787 = vmatpush3.bf16.msra.mxu1 %v1052_v1  ;;  %790 = vmatprep.mubr.msk.bf16.mxu1 %vm991_vm1, %v990_v0 }
 0x875   :  { %788 = vmatprep.subr.bf16.mxu1 %v990_v0 }
 0x878   :  { %789 = vmatpush3.bf16.msra.mxu1 %v1055_v2 }
 0x879   :  { %802 = vmatprep.subr.bf16.mxu1 %v990_v0 }
 0x946   :  { %v335_v10 = vpop.f32.mrb[4].mxu1 }
 0x947   :  { %v341_v11 = vadd.f32 %v335_v10, %v293_v9  ;;  %v776_v12 = vpop.f32.mrb[5].mxu1 }
 0x948   :  { %v338_v13 = vpop.f32.mrb[6].mxu1 }
 0x949   :  { %848 = vtanh.f32 %v341_v11  ;;  %v777_v14 = vpop.f32.mrb[7].mxu1  ;;  %v713_v16 = vmul.f32 -1.442695, %v341_v11 }
 0x94b   :  { %850 = vpow2.f32 %v713_v16 }
 0x953   :  { %v849_v15 = vpop.eup %848 }
 0x954   :  { %351 = vrot.lane.b32.xlu1 %v849_v15, %s988_s0 }
 0x955   :  { %v851_v17 = vpop.eup %850 }
 0x956   :  { %v345_v18 = vadd.f32 1.0, %v851_v17 }
 0x958   :  { %852 = vrcp.f32 %v345_v18 }
 0x962   :  { %v853_v19 = vpop.eup %852 }
 0x963   :  { %v349_v22 = vmul.f32 %v853_v19, %v285_v3 }
 0x9c6   :  { %v352_v20 = vpop.permute.xlu1 %351 }
 0x9c7   :  { %v354_v21 = vmul.f32 %v853_v19, %v352_v20 }
 0x9c9   :  { %356 = vrot.lane.b32.xlu0 %v354_v21, %s992_s1 }
 0xa3b   :  { %v357_v23 = vpop.permute.xlu0 %356 }
 0xa3c   :  { %v359_v24 = vadd.f32 %v357_v23, %v349_v22 }
 0xa3e   :  { %854 = vtanh.f32 %v359_v24 }
 0xa48   :  { %v855_v25 = vpop.eup %854 }
 0xa49   :  { %362 = vrot.lane.b32.xlu1 %v855_v25, %s988_s0 }
 0xabb   :  { %v363_v26 = vpop.permute.xlu1 %362 }
 0xabc   :  { %v365_v27 = vmul.f32 %v853_v19, %v363_v26 }
 0xabe   :  { %v368_v28 = vpack.c.bf16 %v365_v27, %v365_v27 }
 0xac0   :  { %370 = vrot.lane.b32.xlu0 %v368_v28, %s992_s1 }
 0xb32   :  { %v371_v29 = vpop.permute.xlu0 %370 }
 0xb33   :  { %783 = vmatmul.mubr.msk.bf16.vlgmr.msra.gmra.mrb[8].mxu0 %vm48_vm0, %v371_v29  ;;  %v589_v29 = vld [vmem:[#allocation4 + $0x38] sm:$0xff] }
 0xb34   :  { %795 = vmatpush3.bf16.msra.mxu0 %v1052_v1  ;;  %798 = vmatprep.mubr.msk.bf16.mxu0 %vm991_vm1, %v990_v0 }
 0xb35   :  { %796 = vmatprep.subr.bf16.mxu0 %v990_v0 }
 0xb38   :  { %797 = vmatpush3.bf16.msra.mxu0 %v1055_v2 }
 0xc06   :  { %v409_v31 = vpop.f32.mrb[8].mxu0 }
 0xc07   :  { %v415_v32 = vadd.f32 %v409_v31, %v367_v30  ;;  %v784_v33 = vpop.f32.mrb[9].mxu0 }
 0xc08   :  { %v412_v34 = vpop.f32.mrb[10].mxu0 }
 0xc09   :  { %856 = vtanh.f32 %v415_v32  ;;  %v785_v35 = vpop.f32.mrb[11].mxu0  ;;  %v715_v37 = vmul.f32 -1.442695, %v415_v32 }
 0xc0b   :  { %858 = vpow2.f32 %v715_v37 }
 0xc13   :  { %v857_v36 = vpop.eup %856 }
 0xc14   :  { %425 = vrot.lane.b32.xlu1 %v857_v36, %s988_s0 }
 0xc15   :  { %v859_v38 = vpop.eup %858 }
 0xc16   :  { %v419_v39 = vadd.f32 1.0, %v859_v38 }
 0xc18   :  { %860 = vrcp.f32 %v419_v39 }
 0xc22   :  { %v861_v40 = vpop.eup %860 }
 0xc23   :  { %v423_v43 = vmul.f32 %v861_v40, %v359_v24 }
 0xc86   :  { %v426_v41 = vpop.permute.xlu1 %425 }
 0xc87   :  { %v428_v42 = vmul.f32 %v861_v40, %v426_v41 }
 0xc89   :  { %430 = vrot.lane.b32.xlu0 %v428_v42, %s992_s1 }
 0xcfb   :  { %v431_v44 = vpop.permute.xlu0 %430 }
 0xcfc   :  { %v433_v45 = vadd.f32 %v431_v44, %v423_v43 }
 0xcfe   :  { %862 = vtanh.f32 %v433_v45 }
 0xd08   :  { %v863_v46 = vpop.eup %862 }
 0xd09   :  { %436 = vrot.lane.b32.xlu1 %v863_v46, %s988_s0 }
 0xd7b   :  { %v437_v47 = vpop.permute.xlu1 %436 }
 0xd7c   :  { %v439_v48 = vmul.f32 %v861_v40, %v437_v47 }
 0xd7e   :  { %v442_v49 = vpack.c.bf16 %v439_v48, %v439_v48 }
 0xd80   :  { %444 = vrot.lane.b32.xlu0 %v442_v49, %s992_s1 }
 0xdf2   :  { %v445_v50 = vpop.permute.xlu0 %444 }
 0xdf3   :  { %791 = vmatmul.mubr.msk.bf16.vlgmr.msra.gmra.mrb[8].mxu1 %vm48_vm0, %v445_v50 }
 0xdf4   :  { %803 = vmatpush3.bf16.msra.mxu1 %v1052_v1  ;;  %806 = vmatprep.mubr.msk.bf16.mxu1 %vm991_vm1, %v990_v0 }
 0xdf5   :  { %804 = vmatprep.subr.bf16.mxu1 %v990_v0 }
 0xdf8   :  { %805 = vmatpush3.bf16.msra.mxu1 %v1055_v2 }
 0xec6   :  { %v483_v52 = vpop.f32.mrb[8].mxu1 }
 0xec7   :  { %v489_v53 = vadd.f32 %v483_v52, %v441_v51  ;;  %v792_v54 = vpop.f32.mrb[9].mxu1 }
 0xec8   :  { %v486_v55 = vpop.f32.mrb[10].mxu1 }
 0xec9   :  { %864 = vtanh.f32 %v489_v53  ;;  %v793_v56 = vpop.f32.mrb[11].mxu1  ;;  %v717_v58 = vmul.f32 -1.442695, %v489_v53 }
 0xecb   :  { %866 = vpow2.f32 %v717_v58 }
 0xed3   :  { %v865_v57 = vpop.eup %864 }
 0xed4   :  { %499 = vrot.lane.b32.xlu1 %v865_v57, %s988_s0 }
 0xed5   :  { %v867_v1 = vpop.eup %866 }
 0xed6   :  { %v493_v59 = vadd.f32 1.0, %v867_v1 }
 0xed8   :  { %868 = vrcp.f32 %v493_v59 }
 0xee2   :  { %v869_v60 = vpop.eup %868 }
 0xee3   :  { %v497_v2 = vmul.f32 %v869_v60, %v433_v45 }
 0xf46   :  { %v500_v61 = vpop.permute.xlu1 %499 }
 0xf47   :  { %v502_v0 = vmul.f32 %v869_v60, %v500_v61 }
 0xf49   :  { %504 = vrot.lane.b32.xlu0 %v502_v0, %s992_s1 }
 0xfbb   :  { %v505_v62 = vpop.permute.xlu0 %504 }
 0xfbc   :  { %v507_v63 = vadd.f32 %v505_v62, %v497_v2 }
 0xfbe   :  { %870 = vtanh.f32 %v507_v63 }
 0xfc8   :  { %v871_v3 = vpop.eup %870 }
 0xfc9   :  { %510 = vrot.lane.b32.xlu1 %v871_v3, %s988_s0 }
0x103b   :  { %v511_v4 = vpop.permute.xlu1 %510 }
0x103c   :  { %v513_v5 = vmul.f32 %v869_v60, %v511_v4 }
0x103e   :  { %v516_v6 = vpack.c.bf16 %v513_v5, %v513_v5 }
0x1040   :  { %518 = vrot.lane.b32.xlu0 %v516_v6, %s992_s1 }
0x10b2   :  { %v519_v7 = vpop.permute.xlu0 %518 }
0x10b3   :  { %799 = vmatmul.mubr.msk.bf16.vlgmr.msra.gmra.mrb[12].mxu0 %vm48_vm0, %v519_v7 }
0x1186   :  { %v557_v9 = vpop.f32.mrb[12].mxu0 }
0x1187   :  { %v563_v10 = vadd.f32 %v557_v9, %v515_v8  ;;  %v800_v11 = vpop.f32.mrb[13].mxu0 }
0x1188   :  { %v560_v12 = vpop.f32.mrb[14].mxu0 }
0x1189   :  { %872 = vtanh.f32 %v563_v10  ;;  %v801_v13 = vpop.f32.mrb[15].mxu0  ;;  %v719_v15 = vmul.f32 -1.442695, %v563_v10 }
0x118b   :  { %874 = vpow2.f32 %v719_v15 }
0x1193   :  { %v873_v14 = vpop.eup %872 }
0x1194   :  { %573 = vrot.lane.b32.xlu1 %v873_v14, %s988_s0 }
0x1195   :  { %v875_v16 = vpop.eup %874 }
0x1196   :  { %v567_v17 = vadd.f32 1.0, %v875_v16 }
0x1198   :  { %876 = vrcp.f32 %v567_v17 }
0x11a2   :  { %v877_v18 = vpop.eup %876 }
0x11a3   :  { %v571_v21 = vmul.f32 %v877_v18, %v507_v63 }
0x1206   :  { %v574_v19 = vpop.permute.xlu1 %573 }
0x1207   :  { %v576_v20 = vmul.f32 %v877_v18, %v574_v19 }
0x1209   :  { %578 = vrot.lane.b32.xlu0 %v576_v20, %s992_s1 }
0x127b   :  { %v579_v22 = vpop.permute.xlu0 %578 }
0x127c   :  { %v581_v23 = vadd.f32 %v579_v22, %v571_v21 }
0x127e   :  { %878 = vtanh.f32 %v581_v23 }
0x1288   :  { %v879_v24 = vpop.eup %878 }
0x1289   :  { %584 = vrot.lane.b32.xlu1 %v879_v24, %s988_s0 }
0x12fb   :  { %v585_v25 = vpop.permute.xlu1 %584 }
0x12fc   :  { %v587_v26 = vmul.f32 %v877_v18, %v585_v25 }
0x12fe   :  { %v590_v27 = vpack.c.bf16 %v587_v26, %v587_v26 }
0x1300   :  { %592 = vrot.lane.b32.xlu0 %v590_v27, %s992_s1 }
0x1372   :  { %v593_v28 = vpop.permute.xlu0 %592 }
0x1373   :  { %807 = vmatmul.mubr.msk.bf16.vlgmr.msra.gmra.mrb[12].mxu1 %vm48_vm0, %v593_v28 }
0x1446   :  { %v631_v30 = vpop.f32.mrb[12].mxu1 }
0x1447   :  { %v637_v31 = vadd.f32 %v631_v30, %v589_v29  ;;  %v808_v32 = vpop.f32.mrb[13].mxu1 }
0x1448   :  { %v634_v33 = vpop.f32.mrb[14].mxu1 }
0x1449   :  { %880 = vtanh.f32 %v637_v31  ;;  %v809_v34 = vpop.f32.mrb[15].mxu1  ;;  %v721_v36 = vmul.f32 -1.442695, %v637_v31 }
0x144b   :  { %882 = vpow2.f32 %v721_v36 }
0x1453   :  { %v881_v35 = vpop.eup %880 }
0x1454   :  { %647 = vrot.lane.b32.xlu1 %v881_v35, %s988_s0 }
0x1455   :  { %v883_v37 = vpop.eup %882 }
0x1456   :  { %v641_v38 = vadd.f32 1.0, %v883_v37 }
0x1458   :  { %884 = vrcp.f32 %v641_v38 }
0x1462   :  { %v885_v39 = vpop.eup %884 }
0x1463   :  { %v645_v42 = vmul.f32 %v885_v39, %v581_v23 }
0x14c6   :  { %v648_v40 = vpop.permute.xlu1 %647 }
0x14c7   :  { %v650_v41 = vmul.f32 %v885_v39, %v648_v40 }
0x14c9   :  { %652 = vrot.lane.b32.xlu0 %v650_v41, %s992_s1 }
0x153b   :  { %v653_v43 = vpop.permute.xlu0 %652 }
0x153c   :  { %v655_v44 = vadd.f32 %v653_v43, %v645_v42 }
0x153e   :  { %886 = vtanh.f32 %v655_v44 }
0x1548   :  { %v887_v45 = vpop.eup %886 }
0x1549   :  { %658 = vrot.lane.b32.xlu1 %v887_v45, %s988_s0 }
0x154d   :  { %668 = vrot.lane.b32.xlu1 %v655_v44, %s993_s12 }
0x15bb   :  { %v659_v46 = vpop.permute.xlu1 %658 }
0x15bc   :  { %v661_v47 = vmul.f32 %v885_v39, %v659_v46 }
0x15be   :  { %663 = vrot.lane.b32.xlu0 %v661_v47, %s992_s1 }
0x15bf   :  { %v669_v48 = vpop.permute.xlu1 %668 }
0x15c0   :  { %671 = vst.msk [vmem:[#allocation3] sm:$0xff] %vm48_vm0, %v669_v48  ;;  %673 = vst.msk [vmem:[#allocation10] sm:$0xff] %vm48_vm0, %v669_v48 }
0x15c1   :  { %943 = shalt.err (!%p940_p6)
}
0x15c2   :  { %s944_s18 = scalar_lea.hbm %s1170_s3, 128 }
0x15c3   :  { %p945_p7 = scmp.ne.s32.totalorder %s1170_s3, %s944_s18  ;;  %p948_p8 = scmp.lt.u32.totalorder %s944_s18, %s1170_s3 }
0x15c5   :  { %p950_p9 = pnand %p948_p8, %p945_p7 }
0x15c7   :  { %953 = shalt.err (!%p950_p9)
}
0x15c8   :  { %693 = dma.vmem_to_hbm [thread:$0]  %s691_s14, 128, %s1170_s3, [#allocation11]  }
0x15c9   :  { %s995_s25 = smov [#allocation9]  }
0x15ca   :  { %s680_s26 = sshll.u32 %s995_s25, 4  ;;  %s681_s26 = int_to_ptr.vmem [resolvable:$true] %s680_s26 }
0x15cb   :  { %s954_s27 = scalar_lea.vmem %s681_s26, 128  ;;  %p959_p11 = scmp.lt.s32.totalorder %s681_s26, %s681_s26 }
0x15cc   :  { %p955_p10 = scmp.ne.s32.totalorder %s681_s26, %s954_s27  ;;  %p960_p12 = scmp.lt.s32.totalorder %s954_s27, %s954_s27 }
0x15ce   :  { %p961_p13 = por %p960_p12, %p959_p11 }
0x15d0   :  { %p962_p0 = pnand %p961_p13, %p955_p10 }
0x1630   :  { %v664_v49 = vpop.permute.xlu0 %663 }
0x1631   :  { %666 = vst.msk [vmem:[#allocation2] sm:$0xff] %vm48_vm0, %v664_v49  ;;  %672 = vst.msk [vmem:[#allocation9] sm:$0xff] %vm48_vm0, %v664_v49 }
0x1632   :  { %965 = shalt.err (!%p962_p0)
}
0x1633   :  { %s966_s30 = scalar_lea.hbm %s1169_s2, 128 }
0x1634   :  { %p967_p1 = scmp.ne.s32.totalorder %s1169_s2, %s966_s30  ;;  %p970_p2 = scmp.lt.u32.totalorder %s966_s30, %s1169_s2 }
0x1636   :  { %p972_p3 = pnand %p970_p2, %p967_p1 }
0x1638   :  { %975 = shalt.err (!%p972_p3)
}
0x1639   :  { %683 = dma.vmem_to_hbm [thread:$0]  %s681_s26, 128, %s1169_s2, [#allocation6]  }
0x163a   :  { %980 = dma.done.wait [#allocation6], 128  }
0x163b   :  { %981 = vsyncadd [#allocation6], 4294967168 }
0x163c   :  { %982 = dma.done.wait [#allocation11], 128  }
0x163d   :  { %983 = vsyncadd [#allocation11], 4294967168 }
0x163e   :  { %700 = vsyncpa [#allocation5], 1 }
0x163f   :  { %701 = vsyncpa [#allocation8], 1 }
0x1640   :  { %702 = vsyncpa [#allocation6], 1 }
0x1641   :  { %703 = vsyncpa [#allocation11], 1 }

// kernel: nmt_forward.8
= control target key start
LH: loop header
LB: loop body
LE: loop exit
PB: predicated region body
PF: predicated region fallthrough
CT: control target
= control target key end

     0   :  { %9 = vsyncpa [#allocation5], 0  ;;  %s1313_s0 = inlined_call_operand.hbm [shape: f32[8,8,128], index: 0, kind: input, shape index: {}]   ;;  %s1314_s1 = inlined_call_operand.hbm [shape: bf16[32,128], index: 1, kind: input, shape index: {}]   ;;  %s1315_s2 = inlined_call_operand.hbm [shape: f32[8,32], index: 2, kind: input, shape index: {}]   ;;  %s1316_s3 = inlined_call_operand.hbm [shape: f32[8,32], index: 3, kind: input, shape index: {}]   ;;  %s1317_s4 = inlined_call_operand.hbm [shape: f32[8,8,32], index: 4, kind: output, shape index: {}]  }
   0x1   :  { %10 = vsyncpa [#allocation8], 0 }
   0x2   :  { %11 = vsyncpa [#allocation11], 0 }
   0x3   :  { %12 = vsyncpa [#allocation6], 0  ;;  %s1065_s15 = smov [#allocation7]   ;;  %s947_s19 = scalar_lea.hbm %s1314_s1, 256 }
   0x4   :  { %s30_s16 = sshll.u32 %s1065_s15, 4  ;;  %p948_p0 = scmp.ne.s32.totalorder %s1314_s1, %s947_s19  ;;  %s31_s16 = int_to_ptr.vmem [resolvable:$true] %s30_s16 }
   0x5   :  { %p951_p1 = scmp.lt.u32.totalorder %s947_s19, %s1314_s1 }
   0x7   :  { %p953_p2 = pnand %p951_p1, %p948_p0 }
   0x9   :  { %956 = shalt.err (!%p953_p2)
}
   0xa   :  { %s957_s24 = scalar_lea.vmem %s31_s16, 256  ;;  %p962_p4 = scmp.lt.s32.totalorder %s31_s16, %s31_s16 }
   0xb   :  { %p958_p3 = scmp.ne.s32.totalorder %s31_s16, %s957_s24  ;;  %p963_p5 = scmp.lt.s32.totalorder %s957_s24, %s957_s24 }
   0xd   :  { %p964_p6 = por %p963_p5, %p962_p4 }
   0xf   :  { %p965_p7 = pnand %p964_p6, %p958_p3 }
  0x11   :  { %968 = shalt.err (!%p965_p7)
}
  0x12   :  { %s1066_s25 = smov 64   ;;  %s1067_s26 = smov 4  }
  0x13   :  { %36 = dma.hbm_to_vmem [thread:$0]  %s1314_s1, 256, %s31_s16, [#allocation8], %s1066_s25, %s1066_s25, %s1067_s26  }
  0x14   :  { %s1068_s29 = smov [#allocation4]   ;;  %s969_s7 = scalar_lea.hbm %s1313_s0, 1024 }
  0x15   :  { %s18_s30 = sshll.u32 %s1068_s29, 4  ;;  %p970_p8 = scmp.ne.s32.totalorder %s1313_s0, %s969_s7  ;;  %s19_s30 = int_to_ptr.vmem [resolvable:$true] %s18_s30 }
  0x16   :  { %p973_p9 = scmp.lt.u32.totalorder %s969_s7, %s1313_s0 }
  0x18   :  { %p975_p10 = pnand %p973_p9, %p970_p8 }
  0x1a   :  { %978 = shalt.err (!%p975_p10)
}
  0x1b   :  { %s979_s12 = scalar_lea.vmem %s19_s30, 1024  ;;  %p984_p12 = scmp.lt.s32.totalorder %s19_s30, %s19_s30 }
  0x1c   :  { %p980_p11 = scmp.ne.s32.totalorder %s19_s30, %s979_s12  ;;  %p985_p13 = scmp.lt.s32.totalorder %s979_s12, %s979_s12 }
  0x1e   :  { %p986_p0 = por %p985_p13, %p984_p12 }
  0x20   :  { %p987_p1 = pnand %p986_p0, %p980_p11 }
  0x22   :  { %990 = shalt.err (!%p987_p1)
}
  0x23   :  { %s1069_s1 = smov 128   ;;  %s1070_s13 = smov 8  }
  0x24   :  { %24 = dma.hbm_to_vmem [thread:$0]  %s1313_s0, 1024, %s19_s30, [#allocation5], %s1069_s1, %s1069_s1, %s1070_s13  }
  0x25   :  { %s1071_s16 = smov [#allocation9]   ;;  %s1072_s18 = smov [#allocation10]  }
  0x26   :  { %s43_s17 = sshll.u32 %s1071_s16, 4  ;;  %s53_s19 = sshll.u32 %s1072_s18, 4  ;;  %s44_s17 = int_to_ptr.vmem [resolvable:$true] %s43_s17  ;;  %s54_s19 = int_to_ptr.vmem [resolvable:$true] %s53_s19 }
  0x27   :  { %s991_s22 = scalar_lea.hbm %s1315_s2, 128 }
  0x28   :  { %p992_p2 = scmp.ne.s32.totalorder %s1315_s2, %s991_s22  ;;  %p995_p3 = scmp.lt.u32.totalorder %s991_s22, %s1315_s2 }
  0x2a   :  { %p997_p4 = pnand %p995_p3, %p992_p2 }
  0x2c   :  { %1000 = shalt.err (!%p997_p4)
}
  0x2d   :  { %s1001_s0 = scalar_lea.vmem %s44_s17, 128  ;;  %p1006_p6 = scmp.lt.s32.totalorder %s44_s17, %s44_s17 }
  0x2e   :  { %p1002_p5 = scmp.ne.s32.totalorder %s44_s17, %s1001_s0  ;;  %p1007_p7 = scmp.lt.s32.totalorder %s1001_s0, %s1001_s0 }
  0x30   :  { %p1008_p8 = por %p1007_p7, %p1006_p6 }
  0x32   :  { %p1009_p9 = pnand %p1008_p8, %p1002_p5 }
  0x34   :  { %1012 = shalt.err (!%p1009_p9)
}
  0x35   :  { %46 = dma.hbm_to_vmem [thread:$0]  %s1315_s2, 128, %s44_s17, [#allocation8]  }
  0x36   :  { %s1013_s6 = scalar_lea.hbm %s1316_s3, 128 }
  0x37   :  { %p1014_p10 = scmp.ne.s32.totalorder %s1316_s3, %s1013_s6  ;;  %p1017_p11 = scmp.lt.u32.totalorder %s1013_s6, %s1316_s3 }
  0x39   :  { %p1019_p12 = pnand %p1017_p11, %p1014_p10 }
  0x3b   :  { %1022 = shalt.err (!%p1019_p12)
}
  0x3c   :  { %s1023_s11 = scalar_lea.vmem %s54_s19, 128  ;;  %p1028_p0 = scmp.lt.s32.totalorder %s54_s19, %s54_s19 }
  0x3d   :  { %p1024_p13 = scmp.ne.s32.totalorder %s54_s19, %s1023_s11  ;;  %p1029_p1 = scmp.lt.s32.totalorder %s1023_s11, %s1023_s11 }
  0x3f   :  { %p1030_p2 = por %p1029_p1, %p1028_p0 }
  0x41   :  { %p1031_p3 = pnand %p1030_p2, %p1024_p13 }
  0x43   :  { %1034 = shalt.err (!%p1031_p3)
}
  0x44   :  { %56 = dma.hbm_to_vmem [thread:$0]  %s1316_s3, 128, %s54_s19, [#allocation11]  }
  0x45   :  { %1057 = dma.done.wait [#allocation5], 1024  }
  0x46   :  { %1058 = vsyncadd [#allocation5], 4294966272 }
  0x47   :  { %1059 = dma.done.wait [#allocation8], 384  }
  0x48   :  { %1060 = vsyncadd [#allocation8], 4294966912 }
  0x49   :  { %1061 = dma.done.wait [#allocation11], 128  }
  0x4a   :  { %1062 = vsyncadd [#allocation11], 4294967168  ;;  %v1073_v0 = vmov 0.0   ;;  %vm1074_vm0 = vmmov 0   ;;  %v1162_v1 = vld [vmem:[#allocation7] sm:$0xff]   ;;  %vm75_vm1 = vcmask 261120  }
  0x4b   :  { %804 = vmatprep.subr.bf16.mxu0 %v1073_v0  ;;  %808 = vmatprep.mubr.msk.bf16.mxu0 %vm1074_vm0, %v1073_v0  ;;  %v1165_v2 = vld [vmem:[#allocation7 + $0x8] sm:$0xff]   ;;  %v74_v3 = vld [vmem:[#allocation9] sm:$0xff]  ;;  %v77_v6 = vld [vmem:[#allocation10] sm:$0xff]  ;;  %s1075_s3 = smov 32   ;;  %s1076_s14 = smov 96  }
  0x4c   :  { %812 = vmatprep.subr.bf16.mxu1 %v1073_v0  ;;  %816 = vmatprep.mubr.msk.bf16.mxu1 %vm1074_vm0, %v1073_v0  ;;  %76 = vst.msk [vmem:[#allocation2] sm:$0xff] %vm75_vm1, %v74_v3  ;;  %78 = vst.msk [vmem:[#allocation3] sm:$0xff] %vm75_vm1, %v77_v6  ;;  %v85_v7 = vld [vmem:[#allocation4] sm:$0xff]  ;;  %v178_v30 = vld [vmem:[#allocation4 + $0x8] sm:$0xff] }
  0x4d   :  { %805 = vmatpush3.bf16.msra.mxu0 %v1162_v1  ;;  %813 = vmatpush3.bf16.msra.mxu1 %v1162_v1  ;;  %v258_v51 = vld [vmem:[#allocation4 + $0x10] sm:$0xff] }
  0x4e   :  { %806 = vmatprep.subr.bf16.mxu0 %v1073_v0  ;;  %814 = vmatprep.subr.bf16.mxu1 %v1073_v0 }
  0x51   :  { %807 = vmatpush3.bf16.msra.mxu0 %v1165_v2  ;;  %815 = vmatpush3.bf16.msra.mxu1 %v1165_v2 }
  0x52   :  { %820 = vmatprep.subr.bf16.mxu0 %v1073_v0  ;;  %828 = vmatprep.subr.bf16.mxu1 %v1073_v0 }
  0x53   :  { %v83_v4 = vld [vmem:[#allocation2] sm:$0xff]  ;;  %v84_v14 = vld [vmem:[#allocation3] sm:$0xff] }
  0x54   :  { %v86_v5 = vpack.c.bf16 %v83_v4, %v83_v4 }
  0x56   :  { %809 = vmatmul.mubr.msk.bf16.vlgmr.msra.gmra.mrb[0].mxu0 %vm75_vm1, %v86_v5 }
  0x57   :  { %821 = vmatpush3.bf16.msra.mxu0 %v1162_v1  ;;  %824 = vmatprep.mubr.msk.bf16.mxu0 %vm1074_vm0, %v1073_v0 }
  0x58   :  { %822 = vmatprep.subr.bf16.mxu0 %v1073_v0 }
  0x5b   :  { %823 = vmatpush3.bf16.msra.mxu0 %v1165_v2 }
  0x5c   :  { %836 = vmatprep.subr.bf16.mxu0 %v1073_v0 }
 0x129   :  { %v137_v8 = vpop.f32.mrb[0].mxu0 }
 0x12a   :  { %v143_v9 = vadd.f32 %v137_v8, %v85_v7  ;;  %v810_v10 = vpop.f32.mrb[1].mxu0 }
 0x12b   :  { %v140_v11 = vpop.f32.mrb[2].mxu0 }
 0x12c   :  { %v811_v12 = vpop.f32.mrb[3].mxu0  ;;  %883 = vtanh.f32 %v143_v9  ;;  %v765_v15 = vmul.f32 -1.442695, %v143_v9  ;;  %v338_v11 = vld [vmem:[#allocation4 + $0x18] sm:$0xff] }
 0x12e   :  { %885 = vpow2.f32 %v765_v15 }
 0x136   :  { %v884_v13 = vpop.eup %883 }
 0x137   :  { %157 = vrot.lane.b32.xlu0 %v884_v13, %s1066_s25 }
 0x138   :  { %v886_v16 = vpop.eup %885 }
 0x139   :  { %v147_v17 = vadd.f32 1.0, %v886_v16 }
 0x13b   :  { %152 = vrot.lane.b32.xlu0 %v84_v14, %s1075_s3  ;;  %887 = vrcp.f32 %v147_v17 }
 0x145   :  { %v888_v18 = vpop.eup %887 }
 0x1a9   :  { %v158_v19 = vpop.permute.xlu0 %157 }
 0x1aa   :  { %v160_v20 = vmul.f32 %v888_v18, %v158_v19 }
 0x1ac   :  { %162 = vrot.lane.b32.xlu1 %v160_v20, %s1075_s3 }
 0x1ad   :  { %v153_v21 = vpop.permute.xlu0 %152 }
 0x1ae   :  { %v155_v22 = vmul.f32 %v888_v18, %v153_v21 }
 0x21e   :  { %v163_v23 = vpop.permute.xlu1 %162 }
 0x21f   :  { %v165_v24 = vadd.f32 %v163_v23, %v155_v22 }
 0x221   :  { %889 = vtanh.f32 %v165_v24 }
 0x22b   :  { %v890_v25 = vpop.eup %889 }
 0x22c   :  { %168 = vrot.lane.b32.xlu1 %v890_v25, %s1066_s25 }
 0x29e   :  { %v169_v26 = vpop.permute.xlu1 %168 }
 0x29f   :  { %v1187_v27 = vmul.f32 %v888_v18, %v169_v26 }
 0x2a1   :  { %v179_v28 = vpack.c.bf16 %v1187_v27, %v1187_v27 }
 0x2a3   :  { %181 = vrot.lane.b32.xlu0 %v179_v28, %s1075_s3 }
 0x315   :  { %v182_v29 = vpop.permute.xlu0 %181 }
 0x316   :  { %817 = vmatmul.mubr.msk.bf16.vlgmr.msra.gmra.mrb[0].mxu1 %vm75_vm1, %v182_v29 }
 0x317   :  { %829 = vmatpush3.bf16.msra.mxu1 %v1162_v1  ;;  %832 = vmatprep.mubr.msk.bf16.mxu1 %vm1074_vm0, %v1073_v0 }
 0x318   :  { %830 = vmatprep.subr.bf16.mxu1 %v1073_v0 }
 0x31b   :  { %831 = vmatpush3.bf16.msra.mxu1 %v1165_v2 }
 0x31c   :  { %844 = vmatprep.subr.bf16.mxu1 %v1073_v0 }
 0x3e9   :  { %v220_v31 = vpop.f32.mrb[0].mxu1 }
 0x3ea   :  { %v226_v32 = vadd.f32 %v220_v31, %v178_v30  ;;  %v818_v33 = vpop.f32.mrb[1].mxu1 }
 0x3eb   :  { %v223_v34 = vpop.f32.mrb[2].mxu1  ;;  %v418_v33 = vld [vmem:[#allocation4 + $0x20] sm:$0xff] }
 0x3ec   :  { %891 = vtanh.f32 %v226_v32  ;;  %v819_v35 = vpop.f32.mrb[3].mxu1  ;;  %v767_v37 = vmul.f32 -1.442695, %v226_v32 }
 0x3ee   :  { %893 = vpow2.f32 %v767_v37 }
 0x3f6   :  { %v892_v36 = vpop.eup %891 }
 0x3f7   :  { %236 = vrot.lane.b32.xlu1 %v892_v36, %s1066_s25 }
 0x3f8   :  { %v894_v38 = vpop.eup %893 }
 0x3f9   :  { %v230_v39 = vadd.f32 1.0, %v894_v38 }
 0x3fb   :  { %895 = vrcp.f32 %v230_v39 }
 0x405   :  { %v896_v40 = vpop.eup %895 }
 0x406   :  { %v234_v43 = vmul.f32 %v896_v40, %v165_v24 }
 0x469   :  { %v237_v41 = vpop.permute.xlu1 %236 }
 0x46a   :  { %v239_v42 = vmul.f32 %v896_v40, %v237_v41 }
 0x46c   :  { %241 = vrot.lane.b32.xlu0 %v239_v42, %s1075_s3 }
 0x4de   :  { %v242_v44 = vpop.permute.xlu0 %241 }
 0x4df   :  { %v244_v45 = vadd.f32 %v242_v44, %v234_v43 }
 0x4e1   :  { %897 = vtanh.f32 %v244_v45 }
 0x4eb   :  { %v898_v46 = vpop.eup %897 }
 0x4ec   :  { %247 = vrot.lane.b32.xlu1 %v898_v46, %s1066_s25 }
 0x55e   :  { %v248_v47 = vpop.permute.xlu1 %247 }
 0x55f   :  { %v1202_v48 = vmul.f32 %v896_v40, %v248_v47 }
 0x561   :  { %v259_v49 = vpack.c.bf16 %v1202_v48, %v1202_v48 }
 0x563   :  { %261 = vrot.lane.b32.xlu0 %v259_v49, %s1075_s3 }
 0x5d5   :  { %v262_v50 = vpop.permute.xlu0 %261 }
 0x5d6   :  { %825 = vmatmul.mubr.msk.bf16.vlgmr.msra.gmra.mrb[4].mxu0 %vm75_vm1, %v262_v50 }
 0x5d7   :  { %837 = vmatpush3.bf16.msra.mxu0 %v1162_v1  ;;  %840 = vmatprep.mubr.msk.bf16.mxu0 %vm1074_vm0, %v1073_v0 }
 0x5d8   :  { %838 = vmatprep.subr.bf16.mxu0 %v1073_v0 }
 0x5db   :  { %839 = vmatpush3.bf16.msra.mxu0 %v1165_v2 }
 0x5dc   :  { %852 = vmatprep.subr.bf16.mxu0 %v1073_v0 }
 0x6a9   :  { %v300_v52 = vpop.f32.mrb[4].mxu0 }
 0x6aa   :  { %v306_v53 = vadd.f32 %v300_v52, %v258_v51  ;;  %v826_v54 = vpop.f32.mrb[5].mxu0 }
 0x6ab   :  { %v303_v55 = vpop.f32.mrb[6].mxu0 }
 0x6ac   :  { %899 = vtanh.f32 %v306_v53  ;;  %v827_v56 = vpop.f32.mrb[7].mxu0  ;;  %v769_v58 = vmul.f32 -1.442695, %v306_v53  ;;  %v498_v55 = vld [vmem:[#allocation4 + $0x28] sm:$0xff] }
 0x6ae   :  { %901 = vpow2.f32 %v769_v58 }
 0x6b6   :  { %v900_v57 = vpop.eup %899 }
 0x6b7   :  { %316 = vrot.lane.b32.xlu1 %v900_v57, %s1066_s25 }
 0x6b8   :  { %v902_v59 = vpop.eup %901 }
 0x6b9   :  { %v310_v60 = vadd.f32 1.0, %v902_v59 }
 0x6bb   :  { %903 = vrcp.f32 %v310_v60 }
 0x6c5   :  { %v904_v61 = vpop.eup %903 }
 0x6c6   :  { %v314_v3 = vmul.f32 %v904_v61, %v244_v45 }
 0x729   :  { %v317_v62 = vpop.permute.xlu1 %316 }
 0x72a   :  { %v319_v63 = vmul.f32 %v904_v61, %v317_v62 }
 0x72c   :  { %321 = vrot.lane.b32.xlu0 %v319_v63, %s1075_s3 }
 0x79e   :  { %v322_v4 = vpop.permute.xlu0 %321 }
 0x79f   :  { %v324_v5 = vadd.f32 %v322_v4, %v314_v3 }
 0x7a1   :  { %905 = vtanh.f32 %v324_v5 }
 0x7ab   :  { %v906_v6 = vpop.eup %905 }
 0x7ac   :  { %327 = vrot.lane.b32.xlu1 %v906_v6, %s1066_s25 }
 0x81e   :  { %v328_v7 = vpop.permute.xlu1 %327 }
 0x81f   :  { %v1217_v8 = vmul.f32 %v904_v61, %v328_v7 }
 0x821   :  { %v339_v9 = vpack.c.bf16 %v1217_v8, %v1217_v8 }
 0x823   :  { %341 = vrot.lane.b32.xlu0 %v339_v9, %s1075_s3 }
 0x895   :  { %v342_v10 = vpop.permute.xlu0 %341 }
 0x896   :  { %833 = vmatmul.mubr.msk.bf16.vlgmr.msra.gmra.mrb[4].mxu1 %vm75_vm1, %v342_v10 }
 0x897   :  { %845 = vmatpush3.bf16.msra.mxu1 %v1162_v1  ;;  %848 = vmatprep.mubr.msk.bf16.mxu1 %vm1074_vm0, %v1073_v0 }
 0x898   :  { %846 = vmatprep.subr.bf16.mxu1 %v1073_v0 }
 0x89b   :  { %847 = vmatpush3.bf16.msra.mxu1 %v1165_v2 }
 0x89c   :  { %860 = vmatprep.subr.bf16.mxu1 %v1073_v0 }
 0x969   :  { %v380_v12 = vpop.f32.mrb[4].mxu1 }
 0x96a   :  { %v386_v13 = vadd.f32 %v380_v12, %v338_v11  ;;  %v834_v14 = vpop.f32.mrb[5].mxu1 }
 0x96b   :  { %v383_v15 = vpop.f32.mrb[6].mxu1 }
 0x96c   :  { %907 = vtanh.f32 %v386_v13  ;;  %v835_v16 = vpop.f32.mrb[7].mxu1  ;;  %v771_v18 = vmul.f32 -1.442695, %v386_v13  ;;  %v578_v13 = vld [vmem:[#allocation4 + $0x30] sm:$0xff] }
 0x96e   :  { %909 = vpow2.f32 %v771_v18 }
 0x976   :  { %v908_v17 = vpop.eup %907 }
 0x977   :  { %396 = vrot.lane.b32.xlu1 %v908_v17, %s1066_s25 }
 0x978   :  { %v910_v19 = vpop.eup %909 }
 0x979   :  { %v390_v20 = vadd.f32 1.0, %v910_v19 }
 0x97b   :  { %911 = vrcp.f32 %v390_v20 }
 0x985   :  { %v912_v21 = vpop.eup %911 }
 0x986   :  { %v394_v24 = vmul.f32 %v912_v21, %v324_v5 }
 0x9e9   :  { %v397_v22 = vpop.permute.xlu1 %396 }
 0x9ea   :  { %v399_v23 = vmul.f32 %v912_v21, %v397_v22 }
 0x9ec   :  { %401 = vrot.lane.b32.xlu0 %v399_v23, %s1075_s3 }
 0xa5e   :  { %v402_v25 = vpop.permute.xlu0 %401 }
 0xa5f   :  { %v404_v26 = vadd.f32 %v402_v25, %v394_v24 }
 0xa61   :  { %913 = vtanh.f32 %v404_v26 }
 0xa6b   :  { %v914_v28 = vpop.eup %913 }
 0xa6c   :  { %407 = vrot.lane.b32.xlu1 %v914_v28, %s1066_s25 }
 0xade   :  { %v408_v29 = vpop.permute.xlu1 %407 }
 0xadf   :  { %v1232_v30 = vmul.f32 %v912_v21, %v408_v29 }
 0xae1   :  { %v419_v31 = vpack.c.bf16 %v1232_v30, %v1232_v30 }
 0xae3   :  { %421 = vrot.lane.b32.xlu0 %v419_v31, %s1075_s3 }
 0xb55   :  { %v422_v32 = vpop.permute.xlu0 %421 }
 0xb56   :  { %841 = vmatmul.mubr.msk.bf16.vlgmr.msra.gmra.mrb[8].mxu0 %vm75_vm1, %v422_v32 }
 0xb57   :  { %853 = vmatpush3.bf16.msra.mxu0 %v1162_v1  ;;  %856 = vmatprep.mubr.msk.bf16.mxu0 %vm1074_vm0, %v1073_v0 }
 0xb58   :  { %854 = vmatprep.subr.bf16.mxu0 %v1073_v0 }
 0xb5b   :  { %855 = vmatpush3.bf16.msra.mxu0 %v1165_v2 }
 0xc29   :  { %v460_v34 = vpop.f32.mrb[8].mxu0 }
 0xc2a   :  { %v466_v35 = vadd.f32 %v460_v34, %v418_v33  ;;  %v842_v36 = vpop.f32.mrb[9].mxu0 }
 0xc2b   :  { %v463_v37 = vpop.f32.mrb[10].mxu0  ;;  %v658_v36 = vld [vmem:[#allocation4 + $0x38] sm:$0xff] }
 0xc2c   :  { %915 = vtanh.f32 %v466_v35  ;;  %v843_v38 = vpop.f32.mrb[11].mxu0  ;;  %v773_v40 = vmul.f32 -1.442695, %v466_v35 }
 0xc2e   :  { %917 = vpow2.f32 %v773_v40 }
 0xc36   :  { %v916_v39 = vpop.eup %915 }
 0xc37   :  { %476 = vrot.lane.b32.xlu1 %v916_v39, %s1066_s25 }
 0xc38   :  { %v918_v41 = vpop.eup %917 }
 0xc39   :  { %v470_v42 = vadd.f32 1.0, %v918_v41 }
 0xc3b   :  { %919 = vrcp.f32 %v470_v42 }
 0xc45   :  { %v920_v43 = vpop.eup %919 }
 0xc46   :  { %v474_v46 = vmul.f32 %v920_v43, %v404_v26 }
 0xca9   :  { %v477_v44 = vpop.permute.xlu1 %476 }
 0xcaa   :  { %v479_v45 = vmul.f32 %v920_v43, %v477_v44 }
 0xcac   :  { %481 = vrot.lane.b32.xlu0 %v479_v45, %s1075_s3 }
 0xd1e   :  { %v482_v47 = vpop.permute.xlu0 %481 }
 0xd1f   :  { %v484_v49 = vadd.f32 %v482_v47, %v474_v46 }
 0xd21   :  { %921 = vtanh.f32 %v484_v49 }
 0xd2b   :  { %v922_v50 = vpop.eup %921 }
 0xd2c   :  { %487 = vrot.lane.b32.xlu1 %v922_v50, %s1066_s25 }
 0xd9e   :  { %v488_v51 = vpop.permute.xlu1 %487 }
 0xd9f   :  { %v1246_v52 = vmul.f32 %v920_v43, %v488_v51 }
 0xda1   :  { %v499_v53 = vpack.c.bf16 %v1246_v52, %v1246_v52 }
 0xda3   :  { %501 = vrot.lane.b32.xlu0 %v499_v53, %s1075_s3 }
 0xe15   :  { %v502_v54 = vpop.permute.xlu0 %501 }
 0xe16   :  { %849 = vmatmul.mubr.msk.bf16.vlgmr.msra.gmra.mrb[8].mxu1 %vm75_vm1, %v502_v54 }
 0xe17   :  { %861 = vmatpush3.bf16.msra.mxu1 %v1162_v1  ;;  %864 = vmatprep.mubr.msk.bf16.mxu1 %vm1074_vm0, %v1073_v0 }
 0xe18   :  { %862 = vmatprep.subr.bf16.mxu1 %v1073_v0 }
 0xe1b   :  { %863 = vmatpush3.bf16.msra.mxu1 %v1165_v2 }
 0xee9   :  { %v540_v56 = vpop.f32.mrb[8].mxu1 }
 0xeea   :  { %v546_v57 = vadd.f32 %v540_v56, %v498_v55  ;;  %v850_v58 = vpop.f32.mrb[9].mxu1 }
 0xeeb   :  { %v543_v59 = vpop.f32.mrb[10].mxu1 }
 0xeec   :  { %923 = vtanh.f32 %v546_v57  ;;  %v851_v60 = vpop.f32.mrb[11].mxu1  ;;  %v775_v62 = vmul.f32 -1.442695, %v546_v57 }
 0xeee   :  { %925 = vpow2.f32 %v775_v62 }
 0xef6   :  { %v924_v61 = vpop.eup %923 }
 0xef7   :  { %556 = vrot.lane.b32.xlu1 %v924_v61, %s1066_s25 }
 0xef8   :  { %v926_v1 = vpop.eup %925 }
 0xef9   :  { %v550_v63 = vadd.f32 1.0, %v926_v1 }
 0xefb   :  { %927 = vrcp.f32 %v550_v63 }
 0xf05   :  { %v928_v3 = vpop.eup %927 }
 0xf06   :  { %v554_v2 = vmul.f32 %v928_v3, %v484_v49 }
 0xf69   :  { %v557_v4 = vpop.permute.xlu1 %556 }
 0xf6a   :  { %v559_v0 = vmul.f32 %v928_v3, %v557_v4 }
 0xf6c   :  { %561 = vrot.lane.b32.xlu0 %v559_v0, %s1075_s3 }
 0xfde   :  { %v562_v5 = vpop.permute.xlu0 %561 }
 0xfdf   :  { %v564_v6 = vadd.f32 %v562_v5, %v554_v2 }
 0xfe1   :  { %929 = vtanh.f32 %v564_v6 }
 0xfeb   :  { %v930_v7 = vpop.eup %929 }
 0xfec   :  { %567 = vrot.lane.b32.xlu1 %v930_v7, %s1066_s25 }
0x105e   :  { %v568_v9 = vpop.permute.xlu1 %567 }
0x105f   :  { %v1260_v10 = vmul.f32 %v928_v3, %v568_v9 }
0x1061   :  { %v579_v11 = vpack.c.bf16 %v1260_v10, %v1260_v10 }
0x1063   :  { %581 = vrot.lane.b32.xlu0 %v579_v11, %s1075_s3 }
0x10d5   :  { %v582_v12 = vpop.permute.xlu0 %581 }
0x10d6   :  { %857 = vmatmul.mubr.msk.bf16.vlgmr.msra.gmra.mrb[12].mxu0 %vm75_vm1, %v582_v12 }
0x11a9   :  { %v620_v14 = vpop.f32.mrb[12].mxu0 }
0x11aa   :  { %v626_v15 = vadd.f32 %v620_v14, %v578_v13  ;;  %v858_v16 = vpop.f32.mrb[13].mxu0 }
0x11ab   :  { %v623_v17 = vpop.f32.mrb[14].mxu0 }
0x11ac   :  { %931 = vtanh.f32 %v626_v15  ;;  %v859_v18 = vpop.f32.mrb[15].mxu0  ;;  %v777_v20 = vmul.f32 -1.442695, %v626_v15 }
0x11ae   :  { %933 = vpow2.f32 %v777_v20 }
0x11b6   :  { %v932_v19 = vpop.eup %931 }
0x11b7   :  { %636 = vrot.lane.b32.xlu1 %v932_v19, %s1066_s25 }
0x11b8   :  { %v934_v21 = vpop.eup %933 }
0x11b9   :  { %v630_v22 = vadd.f32 1.0, %v934_v21 }
0x11bb   :  { %935 = vrcp.f32 %v630_v22 }
0x11c5   :  { %v936_v23 = vpop.eup %935 }
0x11c6   :  { %v634_v26 = vmul.f32 %v936_v23, %v564_v6 }
0x1229   :  { %v637_v24 = vpop.permute.xlu1 %636 }
0x122a   :  { %v639_v25 = vmul.f32 %v936_v23, %v637_v24 }
0x122c   :  { %641 = vrot.lane.b32.xlu0 %v639_v25, %s1075_s3 }
0x129e   :  { %v642_v28 = vpop.permute.xlu0 %641 }
0x129f   :  { %v644_v29 = vadd.f32 %v642_v28, %v634_v26 }
0x12a1   :  { %937 = vtanh.f32 %v644_v29 }
0x12ab   :  { %v938_v31 = vpop.eup %937 }
0x12ac   :  { %647 = vrot.lane.b32.xlu1 %v938_v31, %s1066_s25 }
0x131e   :  { %v648_v32 = vpop.permute.xlu1 %647 }
0x131f   :  { %v650_v33 = vmul.f32 %v936_v23, %v648_v32 }
0x1321   :  { %v659_v34 = vpack.c.bf16 %v650_v33, %v650_v33 }
0x1323   :  { %661 = vrot.lane.b32.xlu0 %v659_v34, %s1075_s3 }
0x1395   :  { %v662_v35 = vpop.permute.xlu0 %661 }
0x1396   :  { %865 = vmatmul.mubr.msk.bf16.vlgmr.msra.gmra.mrb[12].mxu1 %vm75_vm1, %v662_v35 }
0x1469   :  { %v700_v37 = vpop.f32.mrb[12].mxu1 }
0x146a   :  { %v706_v38 = vadd.f32 %v700_v37, %v658_v36  ;;  %v866_v39 = vpop.f32.mrb[13].mxu1 }
0x146b   :  { %v703_v40 = vpop.f32.mrb[14].mxu1 }
0x146c   :  { %939 = vtanh.f32 %v706_v38  ;;  %v867_v41 = vpop.f32.mrb[15].mxu1  ;;  %v779_v43 = vmul.f32 -1.442695, %v706_v38 }
0x146e   :  { %941 = vpow2.f32 %v779_v43 }
0x1476   :  { %v940_v42 = vpop.eup %939 }
0x1477   :  { %716 = vrot.lane.b32.xlu1 %v940_v42, %s1066_s25 }
0x1478   :  { %v942_v44 = vpop.eup %941 }
0x1479   :  { %v710_v45 = vadd.f32 1.0, %v942_v44 }
0x147b   :  { %943 = vrcp.f32 %v710_v45 }
0x1485   :  { %v944_v46 = vpop.eup %943 }
0x1486   :  { %v714_v50 = vmul.f32 %v944_v46, %v644_v29 }
0x14e9   :  { %v717_v47 = vpop.permute.xlu1 %716 }
0x14ea   :  { %v719_v49 = vmul.f32 %v944_v46, %v717_v47 }
0x14ec   :  { %721 = vrot.lane.b32.xlu0 %v719_v49, %s1075_s3 }
0x14f0   :  { %173 = vrot.lane.b32.xlu0 %v1187_v27, %s1075_s3 }
0x14f4   :  { %332 = vrot.lane.b32.xlu0 %v1217_v8, %s1075_s3 }
0x14f8   :  { %492 = vrot.lane.b32.xlu0 %v1246_v52, %s1075_s3 }
0x14fc   :  { %652 = vrot.lane.b32.xlu0 %v650_v33, %s1075_s3 }
0x155e   :  { %v722_v51 = vpop.permute.xlu0 %721 }
0x155f   :  { %v724_v53 = vadd.f32 %v722_v51, %v714_v50 }
0x1561   :  { %945 = vtanh.f32 %v724_v53  ;;  %739 = vrot.lane.b32.xlu0 %v724_v53, %s1076_s14 }
0x1562   :  { %v174_v54 = vpop.permute.xlu0 %173 }
0x1563   :  { %176 = vst.msk [vmem:[#allocation12] sm:$0xff] %vm75_vm1, %v174_v54 }
0x1566   :  { %v333_v55 = vpop.permute.xlu0 %332 }
0x1567   :  { %336 = vst.msk [vmem:[#allocation12 + $0x10] sm:$0xff] %vm75_vm1, %v333_v55 }
0x156a   :  { %v493_v27 = vpop.permute.xlu0 %492 }
0x156b   :  { %v946_v56 = vpop.eup %945  ;;  %496 = vst.msk [vmem:[#allocation12 + $0x20] sm:$0xff] %vm75_vm1, %v493_v27 }
0x156c   :  { %727 = vrot.lane.b32.xlu1 %v946_v56, %s1066_s25  ;;  %s1077_s25 = smov [#allocation12]  }
0x156d   :  { %s748_s15 = sshll.u32 %s1077_s25, 4  ;;  %s749_s15 = int_to_ptr.vmem [resolvable:$true] %s748_s15 }
0x156e   :  { %v653_v8 = vpop.permute.xlu0 %652  ;;  %s1035_s16 = scalar_lea.vmem %s749_s15, 1024  ;;  %p1040_p5 = scmp.lt.s32.totalorder %s749_s15, %s749_s15 }
0x156f   :  { %656 = vst.msk [vmem:[#allocation12 + $0x30] sm:$0xff] %vm75_vm1, %v653_v8  ;;  %p1036_p4 = scmp.ne.s32.totalorder %s749_s15, %s1035_s16  ;;  %p1041_p6 = scmp.lt.s32.totalorder %s1035_s16, %s1035_s16 }
0x1570   :  { %252 = vrot.lane.b32.xlu1 %v1202_v48, %s1075_s3 }
0x1571   :  { %p1042_p7 = por %p1041_p6, %p1040_p5 }
0x1573   :  { %p1043_p8 = pnand %p1042_p7, %p1036_p4 }
0x1574   :  { %412 = vrot.lane.b32.xlu1 %v1232_v30, %s1075_s3 }
0x1578   :  { %572 = vrot.lane.b32.xlu1 %v1260_v10, %s1075_s3 }
0x15d3   :  { %v740_v52 = vpop.permute.xlu0 %739 }
0x15d4   :  { %742 = vst.msk [vmem:[#allocation3] sm:$0xff] %vm75_vm1, %v740_v52 }
0x15de   :  { %v728_v57 = vpop.permute.xlu1 %727 }
0x15df   :  { %v730_v58 = vmul.f32 %v944_v46, %v728_v57 }
0x15e1   :  { %732 = vrot.lane.b32.xlu1 %v730_v58, %s1075_s3 }
0x15e2   :  { %v253_v59 = vpop.permute.xlu1 %252 }
0x15e3   :  { %256 = vst.msk [vmem:[#allocation12 + $0x8] sm:$0xff] %vm75_vm1, %v253_v59 }
0x15e6   :  { %v413_v60 = vpop.permute.xlu1 %412 }
0x15e7   :  { %416 = vst.msk [vmem:[#allocation12 + $0x18] sm:$0xff] %vm75_vm1, %v413_v60 }
0x15ea   :  { %v573_v48 = vpop.permute.xlu1 %572 }
0x15eb   :  { %576 = vst.msk [vmem:[#allocation12 + $0x28] sm:$0xff] %vm75_vm1, %v573_v48 }
0x1653   :  { %v733_v30 = vpop.permute.xlu1 %732 }
0x1654   :  { %736 = vst.msk [vmem:[#allocation12 + $0x38] sm:$0xff] %vm75_vm1, %v733_v30  ;;  %737 = vst.msk [vmem:[#allocation2] sm:$0xff] %vm75_vm1, %v733_v30 }
0x1655   :  { %1046 = shalt.err (!%p1043_p8)
}
0x1656   :  { %s1047_s19 = scalar_lea.hbm %s1317_s4, 1024 }
0x1657   :  { %p1048_p9 = scmp.ne.s32.totalorder %s1317_s4, %s1047_s19  ;;  %p1051_p10 = scmp.lt.u32.totalorder %s1047_s19, %s1317_s4 }
0x1659   :  { %p1053_p11 = pnand %p1051_p10, %p1048_p9 }
0x165b   :  { %1056 = shalt.err (!%p1053_p11)
}
0x165c   :  { %754 = dma.vmem_to_hbm [thread:$0]  %s749_s15, 1024, %s1317_s4, [#allocation6], %s1069_s1, %s1069_s1, %s1070_s13  }
0x165d   :  { %1063 = dma.done.wait [#allocation6], 1024  }
0x165e   :  { %1064 = vsyncadd [#allocation6], 4294966272 }
0x165f   :  { %758 = vsyncpa [#allocation5], 1 }
0x1660   :  { %759 = vsyncpa [#allocation8], 1 }
0x1661   :  { %760 = vsyncpa [#allocation11], 1 }
0x1662   :  { %761 = vsyncpa [#allocation6], 1 }

</bundles_post_ra>
